<compile_context>
chip_gen: v5e
topology: v5e:2x2
jax: 0.10.0
libtpu: 0.0.40
codegen_flags: <defaults>
</compile_context>

<pallas_src>
import functools

import jax
import jax.numpy as jnp
import numpy as np
from jax import lax
from jax.experimental import pallas as pl
from jax.experimental.pallas import tpu as pltpu

EPS = 1e-5
_BF16 = jnp.bfloat16
_F32 = jnp.float32


def _ru(x, m):
    return ((x + m - 1) // m) * m


def _vmem_limit_bytes():
    # v5e/v6e have 128 MiB VMEM per TensorCore, v7x only 64 MiB: leave headroom.
    try:
        cap = pltpu.get_tpu_info().vmem_capacity_bytes
    except Exception:  # conservative default if the query is unavailable
        cap = 128 * 1024 * 1024
    return int(min(cap * 3 // 4, 96 * 1024 * 1024))


# --------------------- pass A: partial BN1 stats (z never stored) ----------------
def _stats1_kernel(w_ref, x_ref, st_ref):
    z = jnp.dot(w_ref[...], x_ref[...], preferred_element_type=_F32)
    # zero-padded positions contribute exactly 0 to both sums.
    st_ref[:, 0:1] = jnp.sum(z, axis=1, keepdims=True)
    st_ref[:, 1:2] = jnp.sum(z * z, axis=1, keepdims=True)


# ------ pass B: conv1 + BN1 + ReLU + transposed conv as one stacked MXU matmul ----
def _deconv_kernel(x_ref, w1_ref, s1_ref, b1_ref, mp_ref, wstk_ref,
                   y_ref, st_ref, *, C4, Wp, Lo):
    z = jnp.dot(w1_ref[...], x_ref[...], preferred_element_type=_F32)
    # BN1 + ReLU; mask zeroes the pad column / tail so the stencil's zero boundary
    # condition is automatic for the shifted reads below.
    a = (jnp.maximum(z * s1_ref[...] + b1_ref[...], 0.0) * mp_ref[...]).astype(_BF16)

    # Four lane-shifted copies of the padded flat image (p = h*Wp + w), stacked on
    # sublanes so the whole 3x3/stride-2 transposed conv is ONE matmul with K = 4*C4.
    a4 = jnp.concatenate(
        [a[:, 0:Lo],                   # a(h,   w)
         a[:, 1:Lo + 1],               # a(h,   w+1)
         a[:, Wp:Wp + Lo],             # a(h+1, w)
         a[:, Wp + 1:Wp + 1 + Lo]],    # a(h+1, w+1)
        axis=0)
    y4 = jnp.dot(wstk_ref[...], a4, preferred_element_type=_F32)   # (4*C4, Lo)

    mo = mp_ref[:, 0:Lo]
    s = jnp.zeros((C4, 1), _F32)
    ss = jnp.zeros((C4, 1), _F32)
    for p in range(4):                 # output phases -> contiguous lane slabs of y
        yp = y4[p * C4:(p + 1) * C4, :] * mo
        y_ref[:, p * Lo:(p + 1) * Lo] = yp.astype(y_ref.dtype)
        s = s + jnp.sum(yp, axis=1, keepdims=True)
        ss = ss + jnp.sum(yp * yp, axis=1, keepdims=True)
    st_ref[:, 0:1] = s
    st_ref[:, 1:2] = ss


# ------------- pass C: BN2 + ReLU + 1x1 conv, BN3 stats accumulated --------------
def _conv3_kernel(y_ref, s2_ref, b2_ref, w3_ref, m_ref, h_ref, st_ref):
    t = pl.program_id(1)
    h2 = jnp.maximum(y_ref[...].astype(_F32) * s2_ref[...] + b2_ref[...], 0.0)
    h3 = jnp.dot(w3_ref[...], h2.astype(_BF16),
                 preferred_element_type=_F32) * m_ref[...]
    h_ref[...] = h3.astype(h_ref.dtype)

    @pl.when(t == 0)                   # stats block is revisited across t (accumulator)
    def _():
        st_ref[...] = jnp.zeros_like(st_ref)

    st_ref[:, 0:1] += jnp.sum(h3, axis=1, keepdims=True)
    st_ref[:, 1:2] += jnp.sum(h3 * h3, axis=1, keepdims=True)


# ------------------------------ pass D: BN3 + ReLU -------------------------------
def _bn_relu_kernel(h_ref, s_ref, b_ref, o_ref):
    o_ref[...] = jnp.maximum(
        h_ref[...].astype(_F32) * s_ref[...] + b_ref[...], 0.0).astype(o_ref.dtype)


def _bn_scale_shift(stats, count, gamma, beta):
    """Finalize streaming BN stats (training mode, biased variance, eps=1e-5)."""
    # TODO(synk): for very large N*H*W switch to (count, mean, M2) partials + Chan merge.
    tot = jnp.sum(stats, axis=0)                       # (C, 2)
    mean = tot[:, 0] / count
    var = tot[:, 1] / count - mean * mean
    scale = gamma * lax.rsqrt(var + EPS)
    shift = beta - mean * scale
    return scale[:, None].astype(_F32), shift[:, None].astype(_F32)


def decoder_block(x_nchw, params):
    """DecoderBlock forward (training-mode BatchNorm), NCHW in / NCHW out (f32)."""
    (w1, b1, g1, be1, wt, b2, g2, be2, w3, b3, g3, be3) = params
    del b1, b2, b3   # a per-channel conv bias feeding training-mode BN cancels exactly
    N, Cin, H, W = x_nchw.shape
    C4 = w1.shape[0]
    Cout = w3.shape[0]

    # Flat channels-first geometry; positions live on the 128-lane axis.
    Wp = W + 1                               # one zero column of stencil headroom
    Lo_raw = H * Wp                          # per-phase output positions (padded W)
    Lo = _ru(Lo_raw, 512)                    # phase slab width  (=> 4*Lo % 2048 == 0)
    Lp = _ru(Lo + Wp + 1, 128)               # padded input width (shifted-slice headroom)
    L4 = 4 * Lo                              # pass C/D lane extent (4 phase slabs)
    TL = min(2048, L4)                       # lane tile for the pointwise passes
    nT = L4 // TL

    # Input: pad one zero column, flatten, pad tail, pre-cast to bf16 (MXU operand).
    xp = jnp.pad(x_nchw, ((0, 0), (0, 0), (0, 0), (0, 1))).reshape(N, Cin, Lo_raw)
    xp = jnp.pad(xp, ((0, 0), (0, 0), (0, Lp - Lo_raw))).astype(_BF16)

    pos = jnp.arange(Lp, dtype=jnp.int32)
    maskp = (((pos % Wp) < W) & (pos < Lo_raw)).astype(_F32)[None, :]   # (1, Lp)
    mask4 = jnp.tile(maskp[:, :Lo], (1, 4))                             # (1, 4*Lo)

    # Weights as bf16 matrices.  The 9 ConvTranspose taps are merged into one stacked
    # (4*C4, 4*C4) matrix: row block = output phase (0,0)/(0,1)/(1,0)/(1,1),
    # column block = shifted input {a(h,w), a(h,w+1), a(h+1,w), a(h+1,w+1)}.
    w1m = w1[:, :, 0, 0].astype(_BF16)                 # (C4, Cin)
    w3m = w3[:, :, 0, 0].astype(_BF16)                 # (Cout, C4)
    taps = jnp.transpose(wt, (2, 3, 1, 0))             # (kh, kw, out, in)
    z44 = jnp.zeros((C4, C4), _F32)
    row0 = jnp.concatenate([taps[1, 1], z44, z44, z44], axis=1)
    row1 = jnp.concatenate([taps[1, 2], taps[1, 0], z44, z44], axis=1)
    row2 = jnp.concatenate([taps[2, 1], z44, taps[0, 1], z44], axis=1)
    row3 = jnp.concatenate([taps[2, 2], taps[2, 0], taps[0, 2], taps[0, 0]], axis=1)
    wstk = jnp.concatenate([row0, row1, row2, row3], axis=0).astype(_BF16)

    vlim = _vmem_limit_bytes()
    cp1 = pltpu.CompilerParams(dimension_semantics=("parallel",),
                               vmem_limit_bytes=vlim)
    cp2 = pltpu.CompilerParams(dimension_semantics=("parallel", "parallel"),
                               vmem_limit_bytes=vlim)
    cpa = pltpu.CompilerParams(dimension_semantics=("parallel", "arbitrary"),
                               vmem_limit_bytes=vlim)

    # ---- pass A: partial BN1 stats (conv1 output is recomputed in pass B) ----
    st1 = pl.pallas_call(
        _stats1_kernel,
        grid=(N,),
        in_specs=[pl.BlockSpec((C4, Cin), lambda n: (0, 0)),
                  pl.BlockSpec((None, Cin, Lp), lambda n: (n, 0, 0))],
        out_specs=pl.BlockSpec((None, C4, 2), lambda n: (n, 0, 0)),
        out_shape=jax.ShapeDtypeStruct((N, C4, 2), _F32),
        compiler_params=cp1,
    )(w1m, xp)
    sc1, sh1 = _bn_scale_shift(st1, N * H * W, g1, be1)

    # ---- pass B: conv1 + BN1 + ReLU + stride-2 transposed conv + BN2 stats ----
    # TODO(synk): band-split the H axis with a one-row halo per band for very large
    #             H*W (keeps per-step VMEM bounded on v7x's 64 MiB VMEM).
    y, st2 = pl.pallas_call(
        functools.partial(_deconv_kernel, C4=C4, Wp=Wp, Lo=Lo),
        grid=(N,),
        in_specs=[pl.BlockSpec((None, Cin, Lp), lambda n: (n, 0, 0)),
                  pl.BlockSpec((C4, Cin), lambda n: (0, 0)),
                  pl.BlockSpec((C4, 1), lambda n: (0, 0)),
                  pl.BlockSpec((C4, 1), lambda n: (0, 0)),
                  pl.BlockSpec((1, Lp), lambda n: (0, 0)),
                  pl.BlockSpec((4 * C4, 4 * C4), lambda n: (0, 0))],
        out_specs=(pl.BlockSpec((None, C4, L4), lambda n: (n, 0, 0)),
                   pl.BlockSpec((None, C4, 2), lambda n: (n, 0, 0))),
        out_shape=(jax.ShapeDtypeStruct((N, C4, L4), _BF16),
                   jax.ShapeDtypeStruct((N, C4, 2), _F32)),
        compiler_params=cp1,
    )(xp, w1m, sc1, sh1, maskp, wstk)
    sc2, sh2 = _bn_scale_shift(st2, 4 * N * H * W, g2, be2)

    # ---- pass C: BN2 + ReLU + conv3 (1x1), BN3 stats accumulated per image ----
    h3, st3 = pl.pallas_call(
        _conv3_kernel,
        grid=(N, nT),
        in_specs=[pl.BlockSpec((None, C4, TL), lambda n, t: (n, 0, t)),
                  pl.BlockSpec((C4, 1), lambda n, t: (0, 0)),
                  pl.BlockSpec((C4, 1), lambda n, t: (0, 0)),
                  pl.BlockSpec((Cout, C4), lambda n, t: (0, 0)),
                  pl.BlockSpec((1, TL), lambda n, t: (0, t))],
        out_specs=(pl.BlockSpec((None, Cout, TL), lambda n, t: (n, 0, t)),
                   pl.BlockSpec((None, Cout, 2), lambda n, t: (n, 0, 0))),
        out_shape=(jax.ShapeDtypeStruct((N, Cout, L4), _BF16),
                   jax.ShapeDtypeStruct((N, Cout, 2), _F32)),
        compiler_params=cpa,
    )(y, sc2, sh2, w3m, mask4)
    sc3, sh3 = _bn_scale_shift(st3, 4 * N * H * W, g3, be3)

    # ---- pass D: BN3 + ReLU (bf16 out: the transpose glue touches half the bytes) ----
    o = pl.pallas_call(
        _bn_relu_kernel,
        grid=(N, nT),
        in_specs=[pl.BlockSpec((None, Cout, TL), lambda n, t: (n, 0, t)),
                  pl.BlockSpec((Cout, 1), lambda n, t: (0, 0)),
                  pl.BlockSpec((Cout, 1), lambda n, t: (0, 0))],
        out_specs=pl.BlockSpec((None, Cout, TL), lambda n, t: (n, 0, t)),
        out_shape=jax.ShapeDtypeStruct((N, Cout, L4), _BF16),
        compiler_params=cp2,
    )(h3, sc3, sh3)

    # Final layout glue: drop padding and interleave the 4 phase slabs into NCHW.
    o = o.reshape(N, Cout, 2, 2, Lo)[:, :, :, :, :Lo_raw]
    o = o.reshape(N, Cout, 2, 2, H, Wp)[..., :W]
    o = jnp.transpose(o, (0, 1, 4, 2, 5, 3)).reshape(N, Cout, 2 * H, 2 * W)
    return o.astype(_F32)


# ----------------------------- pure-JAX reference --------------------------------
def _bn_train(x, g, b):
    mean = x.mean(axis=(0, 2, 3), keepdims=True)
    var = ((x - mean) ** 2).mean(axis=(0, 2, 3), keepdims=True)
    return (x - mean) * lax.rsqrt(var + EPS) * g[None, :, None, None] + b[None, :, None, None]


def ref_forward(x, params):
    """Reference DecoderBlock forward (training-mode BN); matmul/conv operands in bf16
    with f32 accumulation, mirroring the kernel's MXU precision choice."""
    (w1, b1, g1, be1, wt, b2, g2, be2, w3, b3, g3, be3) = params
    h = jnp.einsum('nchw,oc->nohw', x.astype(_BF16), w1[:, :, 0, 0].astype(_BF16),
                   preferred_element_type=_F32) + b1[None, :, None, None]
    h = jnp.maximum(_bn_train(h, g1, be1), 0.0)
    # ConvTranspose2d(k=3, s=2, p=1, op=1) == conv over stride-dilated input, flipped kernel
    k = jnp.transpose(jnp.flip(wt, axis=(2, 3)), (2, 3, 0, 1))       # HWIO
    h_nhwc = jnp.transpose(h, (0, 2, 3, 1))
    y = lax.conv_general_dilated(
        h_nhwc.astype(_BF16), k.astype(_BF16), window_strides=(1, 1),
        padding=((1, 2), (1, 2)), lhs_dilation=(2, 2),
        dimension_numbers=('NHWC', 'HWIO', 'NHWC'),
        preferred_element_type=_F32)
    y = jnp.transpose(y, (0, 3, 1, 2)) + b2[None, :, None, None]
    y = jnp.maximum(_bn_train(y, g2, be2), 0.0)
    z = jnp.einsum('nchw,oc->nohw', y.astype(_BF16), w3[:, :, 0, 0].astype(_BF16),
                   preferred_element_type=_F32) + b3[None, :, None, None]
    return jnp.maximum(_bn_train(z, g3, be3), 0.0)


if __name__ == "__main__":
    N, Cin, H, W = 2, 32, 16, 16          # in_channels=32 -> C4=8
    n_filters = 16
    C4 = Cin // 4

    key = jax.random.PRNGKey(0)
    ks = jax.random.split(key, 13)

    w1 = 0.3 * jax.random.normal(ks[0], (C4, Cin, 1, 1), _F32)
    b1 = 0.1 * jax.random.normal(ks[1], (C4,), _F32)
    g1 = 1.0 + 0.1 * jax.random.normal(ks[2], (C4,), _F32)
    be1 = 0.1 * jax.random.normal(ks[3], (C4,), _F32)
    wt = 0.3 * jax.random.normal(ks[4], (C4, C4, 3, 3), _F32)     # ConvTranspose2d weight
    b2 = 0.1 * jax.random.normal(ks[5], (C4,), _F32)
    g2 = 1.0 + 0.1 * jax.random.normal(ks[6], (C4,), _F32)
    be2 = 0.1 * jax.random.normal(ks[7], (C4,), _F32)
    w3 = 0.3 * jax.random.normal(ks[8], (n_filters, C4, 1, 1), _F32)
    b3 = 0.1 * jax.random.normal(ks[9], (n_filters,), _F32)
    g3 = 1.0 + 0.1 * jax.random.normal(ks[10], (n_filters,), _F32)
    be3 = 0.1 * jax.random.normal(ks[11], (n_filters,), _F32)
    params = (w1, b1, g1, be1, wt, b2, g2, be2, w3, b3, g3, be3)

    x = jax.random.normal(ks[12], (N, Cin, H, W), _F32)

    out = jax.block_until_ready(jax.jit(decoder_block)(x, params))
    ref = jax.block_until_ready(jax.jit(ref_forward)(x, params))

    assert out.shape == (N, n_filters, 2 * H, 2 * W), out.shape
    # Kernel stores inter-pass activations (and the final output) in bf16 and runs all
    # matmuls with bf16 operands / f32 accumulation; kernel and reference round at
    # different points, so the comparison uses a bf16-level tolerance.
    np.testing.assert_allclose(np.asarray(out), np.asarray(ref), rtol=4e-2, atol=4e-2)

    print("KERNEL_OK")
</pallas_src>

<mosaic_0001>
module attributes {stable_mosaic.version = 11 : i64} {
  func.func @_stats1_kernel(%arg0: i32, %arg1: memref<8x32xbf16, #tpu.memory_space<vmem>>, %arg2: memref<1x32x640xbf16, #tpu.memory_space<vmem>>, %arg3: memref<1x8x2xf32, #tpu.memory_space<vmem>>) attributes {dimension_semantics = [#tpu.dimension_semantics<parallel>], iteration_bounds = array<i64: 2>, scalar_prefetch = 0 : i64, scratch_operands = 0 : i64, tpu.core_type = #tpu.core_type<tc>, window_params = [{pipeline_mode = #tpu.pipeline_mode<synchronous>, transform_indices = @transform_0, window_bounds = array<i64: 8, 32>}, {transform_indices = @transform_1, window_bounds = array<i64: 1, 32, 640>}, {transform_indices = @transform_2, window_bounds = array<i64: 1, 8, 2>}]} {
    %c0 = arith.constant 0 : index
    %c0_0 = arith.constant 0 : index
    %0 = vector.load %arg1[%c0, %c0_0] : memref<8x32xbf16, #tpu.memory_space<vmem>>, vector<8x32xbf16>
    %c0_1 = arith.constant 0 : index
    %c0_2 = arith.constant 0 : index
    %c0_3 = arith.constant 0 : index
    %1 = vector.load %arg2[%c0_1, %c0_2, %c0_3] : memref<1x32x640xbf16, #tpu.memory_space<vmem>>, vector<1x32x640xbf16>
    %2 = vector.shape_cast %1 : vector<1x32x640xbf16> to vector<32x640xbf16>
    %cst = arith.constant dense<0.000000e+00> : vector<8x640xf32>
    %3 = tpu.matmul %0, %2, %cst {dimension_numbers = #tpu.dot_dimension_numbers<[1], [0], [0], [1], [0, 0, 1, 1], [], []>} : vector<8x32xbf16>, vector<32x640xbf16>, vector<8x640xf32> -> vector<8x640xf32>
    %cst_4 = arith.constant dense<0.000000e+00> : vector<8xf32>
    %4 = vector.multi_reduction <add>, %3, %cst_4 [1] : vector<8x640xf32> to vector<8xf32>
    %5 = vector.shape_cast %4 : vector<8xf32> to vector<8x1xf32>
    %c0_5 = arith.constant 0 : index
    %c0_6 = arith.constant 0 : index
    %c0_7 = arith.constant 0 : index
    %6 = vector.load %arg3[%c0_5, %c0_6, %c0_7] : memref<1x8x2xf32, #tpu.memory_space<vmem>>, vector<1x8x1xf32>
    %7 = vector.shape_cast %6 : vector<1x8x1xf32> to vector<8x1xf32>
    %8 = vector.shape_cast %5 : vector<8x1xf32> to vector<1x8x1xf32>
    tpu.vector_store %arg3[%c0_5, %c0_6, %c0_7], %8 {strides = array<i32>} : memref<1x8x2xf32, #tpu.memory_space<vmem>>, vector<1x8x1xf32>,
    %9 = arith.mulf %3, %3 : vector<8x640xf32>
    %cst_8 = arith.constant dense<0.000000e+00> : vector<8xf32>
    %10 = vector.multi_reduction <add>, %9, %cst_8 [1] : vector<8x640xf32> to vector<8xf32>
    %11 = vector.shape_cast %10 : vector<8xf32> to vector<8x1xf32>
    %c0_9 = arith.constant 0 : index
    %c0_10 = arith.constant 0 : index
    %c1 = arith.constant 1 : index
    %12 = vector.load %arg3[%c0_9, %c0_10, %c1] : memref<1x8x2xf32, #tpu.memory_space<vmem>>, vector<1x8x1xf32>
    %13 = vector.shape_cast %12 : vector<1x8x1xf32> to vector<8x1xf32>
    %14 = vector.shape_cast %11 : vector<8x1xf32> to vector<1x8x1xf32>
    tpu.vector_store %arg3[%c0_9, %c0_10, %c1], %14 {strides = array<i32>} : memref<1x8x2xf32, #tpu.memory_space<vmem>>, vector<1x8x1xf32>,
    return
  }
  func.func @transform_0(%arg0: i32) -> (i32, i32) {
    %c0_i32 = arith.constant 0 : i32
    %c0_i32_0 = arith.constant 0 : i32
    %c0_i32_1 = arith.constant 0 : i32
    return %c0_i32, %c0_i32_0 : i32, i32
  }
  func.func @transform_1(%arg0: i32) -> (i32, i32, i32) {
    %c0_i32 = arith.constant 0 : i32
    %c0_i32_0 = arith.constant 0 : i32
    %c0_i32_1 = arith.constant 0 : i32
    return %arg0, %c0_i32, %c0_i32_0 : i32, i32, i32
  }
  func.func @transform_2(%arg0: i32) -> (i32, i32, i32) {
    %c0_i32 = arith.constant 0 : i32
    %c0_i32_0 = arith.constant 0 : i32
    %c0_i32_1 = arith.constant 0 : i32
    return %arg0, %c0_i32, %c0_i32_0 : i32, i32, i32
  }
}

module attributes {stable_mosaic.version = 11 : i64} {
  func.func @_conv3_kernel(%arg0: i32, %arg1: i32, %arg2: memref<1x8x2048xbf16, #tpu.memory_space<vmem>>, %arg3: memref<8x1xf32, #tpu.memory_space<vmem>>, %arg4: memref<8x1xf32, #tpu.memory_space<vmem>>, %arg5: memref<16x8xbf16, #tpu.memory_space<vmem>>, %arg6: memref<1x2048xf32, #tpu.memory_space<vmem>>, %arg7: memref<1x16x2048xbf16, #tpu.memory_space<vmem>>, %arg8: memref<1x16x2xf32, #tpu.memory_space<vmem>>) attributes {dimension_semantics = [#tpu.dimension_semantics<parallel>, #tpu.dimension_semantics<arbitrary>], iteration_bounds = array<i64: 2, 1>, scalar_prefetch = 0 : i64, scratch_operands = 0 : i64, tpu.core_type = #tpu.core_type<tc>, window_params = [{transform_indices = @transform_0, window_bounds = array<i64: 1, 8, 2048>}, {pipeline_mode = #tpu.pipeline_mode<synchronous>, transform_indices = @transform_1, window_bounds = array<i64: 8, 1>}, {pipeline_mode = #tpu.pipeline_mode<synchronous>, transform_indices = @transform_2, window_bounds = array<i64: 8, 1>}, {pipeline_mode = #tpu.pipeline_mode<synchronous>, transform_indices = @transform_3, window_bounds = array<i64: 16, 8>}, {transform_indices = @transform_4, window_bounds = array<i64: 1, 2048>}, {transform_indices = @transform_5, window_bounds = array<i64: 1, 16, 2048>}, {transform_indices = @transform_6, window_bounds = array<i64: 1, 16, 2>}]} {
    %c0 = arith.constant 0 : index
    %c0_0 = arith.constant 0 : index
    %c0_1 = arith.constant 0 : index
    %0 = vector.load %arg2[%c0, %c0_0, %c0_1] : memref<1x8x2048xbf16, #tpu.memory_space<vmem>>, vector<1x8x2048xbf16>
    %1 = vector.shape_cast %0 : vector<1x8x2048xbf16> to vector<8x2048xbf16>
    %2 = arith.extf %1 : vector<8x2048xbf16> to vector<8x2048xf32>
    %c0_2 = arith.constant 0 : index
    %c0_3 = arith.constant 0 : index
    %3 = vector.load %arg3[%c0_2, %c0_3] : memref<8x1xf32, #tpu.memory_space<vmem>>, vector<8x1xf32>
    %4 = vector.broadcast %3 : vector<8x1xf32> to vector<8x2048xf32>
    %5 = arith.mulf %2, %4 : vector<8x2048xf32>
    %c0_4 = arith.constant 0 : index
    %c0_5 = arith.constant 0 : index
    %6 = vector.load %arg4[%c0_4, %c0_5] : memref<8x1xf32, #tpu.memory_space<vmem>>, vector<8x1xf32>
    %7 = vector.broadcast %6 : vector<8x1xf32> to vector<8x2048xf32>
    %8 = arith.addf %5, %7 : vector<8x2048xf32>
    %cst = arith.constant 0.000000e+00 : f32
    %9 = vector.broadcast %cst : f32 to vector<8x2048xf32>
    %10 = arith.maximumf %8, %9 : vector<8x2048xf32>
    %c0_6 = arith.constant 0 : index
    %c0_7 = arith.constant 0 : index
    %11 = vector.load %arg5[%c0_6, %c0_7] : memref<16x8xbf16, #tpu.memory_space<vmem>>, vector<16x8xbf16>
    %12 = arith.truncf %10 : vector<8x2048xf32> to vector<8x2048xbf16>
    %cst_8 = arith.constant dense<0.000000e+00> : vector<16x2048xf32>
    %13 = tpu.matmul %11, %12, %cst_8 {dimension_numbers = #tpu.dot_dimension_numbers<[1], [0], [0], [1], [0, 0, 1, 1], [], []>} : vector<16x8xbf16>, vector<8x2048xbf16>, vector<16x2048xf32> -> vector<16x2048xf32>
    %c0_9 = arith.constant 0 : index
    %c0_10 = arith.constant 0 : index
    %14 = vector.load %arg6[%c0_9, %c0_10] : memref<1x2048xf32, #tpu.memory_space<vmem>>, vector<1x2048xf32>
    %15 = vector.broadcast %14 : vector<1x2048xf32> to vector<16x2048xf32>
    %16 = arith.mulf %13, %15 : vector<16x2048xf32>
    %17 = arith.truncf %16 : vector<16x2048xf32> to vector<16x2048xbf16>
    %c0_11 = arith.constant 0 : index
    %c0_12 = arith.constant 0 : index
    %c0_13 = arith.constant 0 : index
    %18 = vector.load %arg7[%c0_11, %c0_12, %c0_13] : memref<1x16x2048xbf16, #tpu.memory_space<vmem>>, vector<1x16x2048xbf16>
    %19 = vector.shape_cast %18 : vector<1x16x2048xbf16> to vector<16x2048xbf16>
    %20 = vector.shape_cast %17 : vector<16x2048xbf16> to vector<1x16x2048xbf16>
    tpu.vector_store %arg7[%c0_11, %c0_12, %c0_13], %20 {strides = array<i32>} : memref<1x16x2048xbf16, #tpu.memory_space<vmem>>, vector<1x16x2048xbf16>,
    %c0_i32 = arith.constant 0 : i32
    %21 = arith.cmpi eq, %arg1, %c0_i32 : i32
    %22 = arith.extui %21 : i1 to i32
    %c0_i32_14 = arith.constant 0 : i32
    %23 = arith.cmpi ne, %22, %c0_i32_14 : i32
    scf.if %23 {
      %cst_28 = arith.constant 0.000000e+00 : f32
      %41 = vector.broadcast %cst_28 : f32 to vector<16x2xf32>
      %c0_29 = arith.constant 0 : index
      %c0_30 = arith.constant 0 : index
      %c0_31 = arith.constant 0 : index
      %42 = vector.load %arg8[%c0_29, %c0_30, %c0_31] : memref<1x16x2xf32, #tpu.memory_space<vmem>>, vector<1x16x2xf32>
      %43 = vector.shape_cast %42 : vector<1x16x2xf32> to vector<16x2xf32>
      %44 = vector.shape_cast %41 : vector<16x2xf32> to vector<1x16x2xf32>
      tpu.vector_store %arg8[%c0_29, %c0_30, %c0_31], %44 {strides = array<i32>} : memref<1x16x2xf32, #tpu.memory_space<vmem>>, vector<1x16x2xf32>,
    } else {
    }
    %c0_15 = arith.constant 0 : index
    %c0_16 = arith.constant 0 : index
    %c0_17 = arith.constant 0 : index
    %24 = vector.load %arg8[%c0_15, %c0_16, %c0_17] : memref<1x16x2xf32, #tpu.memory_space<vmem>>, vector<1x16x1xf32>
    %25 = vector.shape_cast %24 : vector<1x16x1xf32> to vector<16x1xf32>
    %cst_18 = arith.constant dense<0.000000e+00> : vector<16xf32>
    %26 = vector.multi_reduction <add>, %16, %cst_18 [1] : vector<16x2048xf32> to vector<16xf32>
    %27 = vector.shape_cast %26 : vector<16xf32> to vector<16x1xf32>
    %28 = arith.addf %25, %27 : vector<16x1xf32>
    %c0_19 = arith.constant 0 : index
    %c0_20 = arith.constant 0 : index
    %c0_21 = arith.constant 0 : index
    %29 = vector.load %arg8[%c0_19, %c0_20, %c0_21] : memref<1x16x2xf32, #tpu.memory_space<vmem>>, vector<1x16x1xf32>
    %30 = vector.shape_cast %29 : vector<1x16x1xf32> to vector<16x1xf32>
    %31 = vector.shape_cast %28 : vector<16x1xf32> to vector<1x16x1xf32>
    tpu.vector_store %arg8[%c0_19, %c0_20, %c0_21], %31 {strides = array<i32>} : memref<1x16x2xf32, #tpu.memory_space<vmem>>, vector<1x16x1xf32>,
    %c0_22 = arith.constant 0 : index
    %c0_23 = arith.constant 0 : index
    %c1 = arith.constant 1 : index
    %32 = vector.load %arg8[%c0_22, %c0_23, %c1] : memref<1x16x2xf32, #tpu.memory_space<vmem>>, vector<1x16x1xf32>
    %33 = vector.shape_cast %32 : vector<1x16x1xf32> to vector<16x1xf32>
    %34 = arith.mulf %16, %16 : vector<16x2048xf32>
    %cst_24 = arith.constant dense<0.000000e+00> : vector<16xf32>
    %35 = vector.multi_reduction <add>, %34, %cst_24 [1] : vector<16x2048xf32> to vector<16xf32>
    %36 = vector.shape_cast %35 : vector<16xf32> to vector<16x1xf32>
    %37 = arith.addf %33, %36 : vector<16x1xf32>
    %c0_25 = arith.constant 0 : index
    %c0_26 = arith.constant 0 : index
    %c1_27 = arith.constant 1 : index
    %38 = vector.load %arg8[%c0_25, %c0_26, %c1_27] : memref<1x16x2xf32, #tpu.memory_space<vmem>>, vector<1x16x1xf32>
    %39 = vector.shape_cast %38 : vector<1x16x1xf32> to vector<16x1xf32>
    %40 = vector.shape_cast %37 : vector<16x1xf32> to vector<1x16x1xf32>
    tpu.vector_store %arg8[%c0_25, %c0_26, %c1_27], %40 {strides = array<i32>} : memref<1x16x2xf32, #tpu.memory_space<vmem>>, vector<1x16x1xf32>,
    return
  }
  func.func @transform_0(%arg0: i32, %arg1: i32) -> (i32, i32, i32) {
    %c0_i32 = arith.constant 0 : i32
    %c0_i32_0 = arith.constant 0 : i32
    return %arg0, %c0_i32, %arg1 : i32, i32, i32
  }
  func.func @transform_1(%arg0: i32, %arg1: i32) -> (i32, i32) {
    %c0_i32 = arith.constant 0 : i32
    %c0_i32_0 = arith.constant 0 : i32
    %c0_i32_1 = arith.constant 0 : i32
    return %c0_i32, %c0_i32_0 : i32, i32
  }
  func.func @transform_2(%arg0: i32, %arg1: i32) -> (i32, i32) {
    %c0_i32 = arith.constant 0 : i32
    %c0_i32_0 = arith.constant 0 : i32
    %c0_i32_1 = arith.constant 0 : i32
    return %c0_i32, %c0_i32_0 : i32, i32
  }
  func.func @transform_3(%arg0: i32, %arg1: i32) -> (i32, i32) {
    %c0_i32 = arith.constant 0 : i32
    %c0_i32_0 = arith.constant 0 : i32
    %c0_i32_1 = arith.constant 0 : i32
    return %c0_i32, %c0_i32_0 : i32, i32
  }
  func.func @transform_4(%arg0: i32, %arg1: i32) -> (i32, i32) {
    %c0_i32 = arith.constant 0 : i32
    %c0_i32_0 = arith.constant 0 : i32
    return %c0_i32, %arg1 : i32, i32
  }
  func.func @transform_5(%arg0: i32, %arg1: i32) -> (i32, i32, i32) {
    %c0_i32 = arith.constant 0 : i32
    %c0_i32_0 = arith.constant 0 : i32
    return %arg0, %c0_i32, %arg1 : i32, i32, i32
  }
  func.func @transform_6(%arg0: i32, %arg1: i32) -> (i32, i32, i32) {
    %c0_i32 = arith.constant 0 : i32
    %c0_i32_0 = arith.constant 0 : i32
    %c0_i32_1 = arith.constant 0 : i32
    return %arg0, %c0_i32, %c0_i32_0 : i32, i32, i32
  }
}

module attributes {stable_mosaic.version = 11 : i64} {
  func.func @_deconv_kernel(%arg0: i32, %arg1: memref<1x32x640xbf16, #tpu.memory_space<vmem>>, %arg2: memref<8x32xbf16, #tpu.memory_space<vmem>>, %arg3: memref<8x1xf32, #tpu.memory_space<vmem>>, %arg4: memref<8x1xf32, #tpu.memory_space<vmem>>, %arg5: memref<1x640xf32, #tpu.memory_space<vmem>>, %arg6: memref<32x32xbf16, #tpu.memory_space<vmem>>, %arg7: memref<1x8x2048xbf16, #tpu.memory_space<vmem>>, %arg8: memref<1x8x2xf32, #tpu.memory_space<vmem>>) attributes {dimension_semantics = [#tpu.dimension_semantics<parallel>], iteration_bounds = array<i64: 2>, scalar_prefetch = 0 : i64, scratch_operands = 0 : i64, tpu.core_type = #tpu.core_type<tc>, window_params = [{transform_indices = @transform_0, window_bounds = array<i64: 1, 32, 640>}, {pipeline_mode = #tpu.pipeline_mode<synchronous>, transform_indices = @transform_1, window_bounds = array<i64: 8, 32>}, {pipeline_mode = #tpu.pipeline_mode<synchronous>, transform_indices = @transform_2, window_bounds = array<i64: 8, 1>}, {pipeline_mode = #tpu.pipeline_mode<synchronous>, transform_indices = @transform_3, window_bounds = array<i64: 8, 1>}, {pipeline_mode = #tpu.pipeline_mode<synchronous>, transform_indices = @transform_4, window_bounds = array<i64: 1, 640>}, {pipeline_mode = #tpu.pipeline_mode<synchronous>, transform_indices = @transform_5, window_bounds = array<i64: 32, 32>}, {transform_indices = @transform_6, window_bounds = array<i64: 1, 8, 2048>}, {transform_indices = @transform_7, window_bounds = array<i64: 1, 8, 2>}]} {
    %c0 = arith.constant 0 : index
    %c0_0 = arith.constant 0 : index
    %0 = vector.load %arg2[%c0, %c0_0] : memref<8x32xbf16, #tpu.memory_space<vmem>>, vector<8x32xbf16>
    %c0_1 = arith.constant 0 : index
    %c0_2 = arith.constant 0 : index
    %c0_3 = arith.constant 0 : index
    %1 = vector.load %arg1[%c0_1, %c0_2, %c0_3] : memref<1x32x640xbf16, #tpu.memory_space<vmem>>, vector<1x32x640xbf16>
    %2 = vector.shape_cast %1 : vector<1x32x640xbf16> to vector<32x640xbf16>
    %cst = arith.constant dense<0.000000e+00> : vector<8x640xf32>
    %3 = tpu.matmul %0, %2, %cst {dimension_numbers = #tpu.dot_dimension_numbers<[1], [0], [0], [1], [0, 0, 1, 1], [], []>} : vector<8x32xbf16>, vector<32x640xbf16>, vector<8x640xf32> -> vector<8x640xf32>
    %c0_4 = arith.constant 0 : index
    %c0_5 = arith.constant 0 : index
    %4 = vector.load %arg3[%c0_4, %c0_5] : memref<8x1xf32, #tpu.memory_space<vmem>>, vector<8x1xf32>
    %5 = vector.broadcast %4 : vector<8x1xf32> to vector<8x640xf32>
    %6 = arith.mulf %3, %5 : vector<8x640xf32>
    %c0_6 = arith.constant 0 : index
    %c0_7 = arith.constant 0 : index
    %7 = vector.load %arg4[%c0_6, %c0_7] : memref<8x1xf32, #tpu.memory_space<vmem>>, vector<8x1xf32>
    %8 = vector.broadcast %7 : vector<8x1xf32> to vector<8x640xf32>
    %9 = arith.addf %6, %8 : vector<8x640xf32>
    %cst_8 = arith.constant 0.000000e+00 : f32
    %10 = vector.broadcast %cst_8 : f32 to vector<8x640xf32>
    %11 = arith.maximumf %9, %10 : vector<8x640xf32>
    %c0_9 = arith.constant 0 : index
    %c0_10 = arith.constant 0 : index
    %12 = vector.load %arg5[%c0_9, %c0_10] : memref<1x640xf32, #tpu.memory_space<vmem>>, vector<1x640xf32>
    %13 = vector.broadcast %12 : vector<1x640xf32> to vector<8x640xf32>
    %14 = arith.mulf %11, %13 : vector<8x640xf32>
    %15 = arith.truncf %14 : vector<8x640xf32> to vector<8x640xbf16>
    %16 = vector.extract_strided_slice %15 {offsets = [0, 0], sizes = [8, 512], strides = [1, 1]} : vector<8x640xbf16> to vector<8x512xbf16>
    %17 = vector.extract_strided_slice %15 {offsets = [0, 1], sizes = [8, 512], strides = [1, 1]} : vector<8x640xbf16> to vector<8x512xbf16>
    %18 = vector.extract_strided_slice %15 {offsets = [0, 17], sizes = [8, 512], strides = [1, 1]} : vector<8x640xbf16> to vector<8x512xbf16>
    %19 = vector.extract_strided_slice %15 {offsets = [0, 18], sizes = [8, 512], strides = [1, 1]} : vector<8x640xbf16> to vector<8x512xbf16>
    %20 = tpu.concatenate %16, %17, %18, %19 in 0 : vector<8x512xbf16>, vector<8x512xbf16>, vector<8x512xbf16>, vector<8x512xbf16> -> vector<32x512xbf16>
    %c0_11 = arith.constant 0 : index
    %c0_12 = arith.constant 0 : index
    %21 = vector.load %arg6[%c0_11, %c0_12] : memref<32x32xbf16, #tpu.memory_space<vmem>>, vector<32x32xbf16>
    %cst_13 = arith.constant dense<0.000000e+00> : vector<32x512xf32>
    %22 = tpu.matmul %21, %20, %cst_13 {dimension_numbers = #tpu.dot_dimension_numbers<[1], [0], [0], [1], [0, 0, 1, 1], [], []>} : vector<32x32xbf16>, vector<32x512xbf16>, vector<32x512xf32> -> vector<32x512xf32>
    %c0_14 = arith.constant 0 : index
    %c0_15 = arith.constant 0 : index
    %23 = vector.load %arg5[%c0_14, %c0_15] : memref<1x640xf32, #tpu.memory_space<vmem>>, vector<1x512xf32>
    %cst_16 = arith.constant 0.000000e+00 : f32
    %24 = vector.broadcast %cst_16 : f32 to vector<8x1xf32>
    %cst_17 = arith.constant 0.000000e+00 : f32
    %25 = vector.broadcast %cst_17 : f32 to vector<8x1xf32>
    %26 = vector.extract_strided_slice %22 {offsets = [0, 0], sizes = [8, 512], strides = [1, 1]} : vector<32x512xf32> to vector<8x512xf32>
    %27 = vector.broadcast %23 : vector<1x512xf32> to vector<8x512xf32>
    %28 = arith.mulf %26, %27 : vector<8x512xf32>
    %29 = arith.truncf %28 : vector<8x512xf32> to vector<8x512xbf16>
    %c0_18 = arith.constant 0 : index
    %c0_19 = arith.constant 0 : index
    %c0_20 = arith.constant 0 : index
    %30 = vector.load %arg7[%c0_18, %c0_19, %c0_20] : memref<1x8x2048xbf16, #tpu.memory_space<vmem>>, vector<1x8x512xbf16>
    %31 = vector.shape_cast %30 : vector<1x8x512xbf16> to vector<8x512xbf16>
    %32 = vector.shape_cast %29 : vector<8x512xbf16> to vector<1x8x512xbf16>
    tpu.vector_store %arg7[%c0_18, %c0_19, %c0_20], %32 {strides = array<i32>} : memref<1x8x2048xbf16, #tpu.memory_space<vmem>>, vector<1x8x512xbf16>,
    %cst_21 = arith.constant dense<0.000000e+00> : vector<8xf32>
    %33 = vector.multi_reduction <add>, %28, %cst_21 [1] : vector<8x512xf32> to vector<8xf32>
    %34 = vector.shape_cast %33 : vector<8xf32> to vector<8x1xf32>
    %35 = arith.addf %24, %34 : vector<8x1xf32>
    %36 = arith.mulf %28, %28 : vector<8x512xf32>
    %cst_22 = arith.constant dense<0.000000e+00> : vector<8xf32>
    %37 = vector.multi_reduction <add>, %36, %cst_22 [1] : vector<8x512xf32> to vector<8xf32>
    %38 = vector.shape_cast %37 : vector<8xf32> to vector<8x1xf32>
    %39 = arith.addf %25, %38 : vector<8x1xf32>
    %40 = vector.extract_strided_slice %22 {offsets = [8, 0], sizes = [8, 512], strides = [1, 1]} : vector<32x512xf32> to vector<8x512xf32>
    %41 = vector.broadcast %23 : vector<1x512xf32> to vector<8x512xf32>
    %42 = arith.mulf %40, %41 : vector<8x512xf32>
    %43 = arith.truncf %42 : vector<8x512xf32> to vector<8x512xbf16>
    %c0_23 = arith.constant 0 : index
    %c0_24 = arith.constant 0 : index
    %c512 = arith.constant 512 : index
    %44 = vector.load %arg7[%c0_23, %c0_24, %c512] : memref<1x8x2048xbf16, #tpu.memory_space<vmem>>, vector<1x8x512xbf16>
    %45 = vector.shape_cast %44 : vector<1x8x512xbf16> to vector<8x512xbf16>
    %46 = vector.shape_cast %43 : vector<8x512xbf16> to vector<1x8x512xbf16>
    tpu.vector_store %arg7[%c0_23, %c0_24, %c512], %46 {strides = array<i32>} : memref<1x8x2048xbf16, #tpu.memory_space<vmem>>, vector<1x8x512xbf16>,
    %cst_25 = arith.constant dense<0.000000e+00> : vector<8xf32>
    %47 = vector.multi_reduction <add>, %42, %cst_25 [1] : vector<8x512xf32> to vector<8xf32>
    %48 = vector.shape_cast %47 : vector<8xf32> to vector<8x1xf32>
    %49 = arith.addf %35, %48 : vector<8x1xf32>
    %50 = arith.mulf %42, %42 : vector<8x512xf32>
    %cst_26 = arith.constant dense<0.000000e+00> : vector<8xf32>
    %51 = vector.multi_reduction <add>, %50, %cst_26 [1] : vector<8x512xf32> to vector<8xf32>
    %52 = vector.shape_cast %51 : vector<8xf32> to vector<8x1xf32>
    %53 = arith.addf %39, %52 : vector<8x1xf32>
    %54 = vector.extract_strided_slice %22 {offsets = [16, 0], sizes = [8, 512], strides = [1, 1]} : vector<32x512xf32> to vector<8x512xf32>
    %55 = vector.broadcast %23 : vector<1x512xf32> to vector<8x512xf32>
    %56 = arith.mulf %54, %55 : vector<8x512xf32>
    %57 = arith.truncf %56 : vector<8x512xf32> to vector<8x512xbf16>
    %c0_27 = arith.constant 0 : index
    %c0_28 = arith.constant 0 : index
    %c1024 = arith.constant 1024 : index
    %58 = vector.load %arg7[%c0_27, %c0_28, %c1024] : memref<1x8x2048xbf16, #tpu.memory_space<vmem>>, vector<1x8x512xbf16>
    %59 = vector.shape_cast %58 : vector<1x8x512xbf16> to vector<8x512xbf16>
    %60 = vector.shape_cast %57 : vector<8x512xbf16> to vector<1x8x512xbf16>
    tpu.vector_store %arg7[%c0_27, %c0_28, %c1024], %60 {strides = array<i32>} : memref<1x8x2048xbf16, #tpu.memory_space<vmem>>, vector<1x8x512xbf16>,
    %cst_29 = arith.constant dense<0.000000e+00> : vector<8xf32>
    %61 = vector.multi_reduction <add>, %56, %cst_29 [1] : vector<8x512xf32> to vector<8xf32>
    %62 = vector.shape_cast %61 : vector<8xf32> to vector<8x1xf32>
    %63 = arith.addf %49, %62 : vector<8x1xf32>
    %64 = arith.mulf %56, %56 : vector<8x512xf32>
    %cst_30 = arith.constant dense<0.000000e+00> : vector<8xf32>
    %65 = vector.multi_reduction <add>, %64, %cst_30 [1] : vector<8x512xf32> to vector<8xf32>
    %66 = vector.shape_cast %65 : vector<8xf32> to vector<8x1xf32>
    %67 = arith.addf %53, %66 : vector<8x1xf32>
    %68 = vector.extract_strided_slice %22 {offsets = [24, 0], sizes = [8, 512], strides = [1, 1]} : vector<32x512xf32> to vector<8x512xf32>
    %69 = vector.broadcast %23 : vector<1x512xf32> to vector<8x512xf32>
    %70 = arith.mulf %68, %69 : vector<8x512xf32>
    %71 = arith.truncf %70 : vector<8x512xf32> to vector<8x512xbf16>
    %c0_31 = arith.constant 0 : index
    %c0_32 = arith.constant 0 : index
    %c1536 = arith.constant 1536 : index
    %72 = vector.load %arg7[%c0_31, %c0_32, %c1536] : memref<1x8x2048xbf16, #tpu.memory_space<vmem>>, vector<1x8x512xbf16>
    %73 = vector.shape_cast %72 : vector<1x8x512xbf16> to vector<8x512xbf16>
    %74 = vector.shape_cast %71 : vector<8x512xbf16> to vector<1x8x512xbf16>
    tpu.vector_store %arg7[%c0_31, %c0_32, %c1536], %74 {strides = array<i32>} : memref<1x8x2048xbf16, #tpu.memory_space<vmem>>, vector<1x8x512xbf16>,
    %cst_33 = arith.constant dense<0.000000e+00> : vector<8xf32>
    %75 = vector.multi_reduction <add>, %70, %cst_33 [1] : vector<8x512xf32> to vector<8xf32>
    %76 = vector.shape_cast %75 : vector<8xf32> to vector<8x1xf32>
    %77 = arith.addf %63, %76 : vector<8x1xf32>
    %78 = arith.mulf %70, %70 : vector<8x512xf32>
    %cst_34 = arith.constant dense<0.000000e+00> : vector<8xf32>
    %79 = vector.multi_reduction <add>, %78, %cst_34 [1] : vector<8x512xf32> to vector<8xf32>
    %80 = vector.shape_cast %79 : vector<8xf32> to vector<8x1xf32>
    %81 = arith.addf %67, %80 : vector<8x1xf32>
    %c0_35 = arith.constant 0 : index
    %c0_36 = arith.constant 0 : index
    %c0_37 = arith.constant 0 : index
    %82 = vector.load %arg8[%c0_35, %c0_36, %c0_37] : memref<1x8x2xf32, #tpu.memory_space<vmem>>, vector<1x8x1xf32>
    %83 = vector.shape_cast %82 : vector<1x8x1xf32> to vector<8x1xf32>
    %84 = vector.shape_cast %77 : vector<8x1xf32> to vector<1x8x1xf32>
    tpu.vector_store %arg8[%c0_35, %c0_36, %c0_37], %84 {strides = array<i32>} : memref<1x8x2xf32, #tpu.memory_space<vmem>>, vector<1x8x1xf32>,
    %c0_38 = arith.constant 0 : index
    %c0_39 = arith.constant 0 : index
    %c1 = arith.constant 1 : index
    %85 = vector.load %arg8[%c0_38, %c0_39, %c1] : memref<1x8x2xf32, #tpu.memory_space<vmem>>, vector<1x8x1xf32>
    %86 = vector.shape_cast %85 : vector<1x8x1xf32> to vector<8x1xf32>
    %87 = vector.shape_cast %81 : vector<8x1xf32> to vector<1x8x1xf32>
    tpu.vector_store %arg8[%c0_38, %c0_39, %c1], %87 {strides = array<i32>} : memref<1x8x2xf32, #tpu.memory_space<vmem>>, vector<1x8x1xf32>,
    return
  }
  func.func @transform_0(%arg0: i32) -> (i32, i32, i32) {
    %c0_i32 = arith.constant 0 : i32
    %c0_i32_0 = arith.constant 0 : i32
    %c0_i32_1 = arith.constant 0 : i32
    return %arg0, %c0_i32, %c0_i32_0 : i32, i32, i32
  }
  func.func @transform_1(%arg0: i32) -> (i32, i32) {
    %c0_i32 = arith.constant 0 : i32
    %c0_i32_0 = arith.constant 0 : i32
    %c0_i32_1 = arith.constant 0 : i32
    return %c0_i32, %c0_i32_0 : i32, i32
  }
  func.func @transform_2(%arg0: i32) -> (i32, i32) {
    %c0_i32 = arith.constant 0 : i32
    %c0_i32_0 = arith.constant 0 : i32
    %c0_i32_1 = arith.constant 0 : i32
    return %c0_i32, %c0_i32_0 : i32, i32
  }
  func.func @transform_3(%arg0: i32) -> (i32, i32) {
    %c0_i32 = arith.constant 0 : i32
    %c0_i32_0 = arith.constant 0 : i32
    %c0_i32_1 = arith.constant 0 : i32
    return %c0_i32, %c0_i32_0 : i32, i32
  }
  func.func @transform_4(%arg0: i32) -> (i32, i32) {
    %c0_i32 = arith.constant 0 : i32
    %c0_i32_0 = arith.constant 0 : i32
    %c0_i32_1 = arith.constant 0 : i32
    return %c0_i32, %c0_i32_0 : i32, i32
  }
  func.func @transform_5(%arg0: i32) -> (i32, i32) {
    %c0_i32 = arith.constant 0 : i32
    %c0_i32_0 = arith.constant 0 : i32
    %c0_i32_1 = arith.constant 0 : i32
    return %c0_i32, %c0_i32_0 : i32, i32
  }
  func.func @transform_6(%arg0: i32) -> (i32, i32, i32) {
    %c0_i32 = arith.constant 0 : i32
    %c0_i32_0 = arith.constant 0 : i32
    %c0_i32_1 = arith.constant 0 : i32
    return %arg0, %c0_i32, %c0_i32_0 : i32, i32, i32
  }
  func.func @transform_7(%arg0: i32) -> (i32, i32, i32) {
    %c0_i32 = arith.constant 0 : i32
    %c0_i32_0 = arith.constant 0 : i32
    %c0_i32_1 = arith.constant 0 : i32
    return %arg0, %c0_i32, %c0_i32_0 : i32, i32, i32
  }
}

module attributes {stable_mosaic.version = 11 : i64} {
  func.func @_bn_relu_kernel(%arg0: i32, %arg1: i32, %arg2: memref<1x16x2048xbf16, #tpu.memory_space<vmem>>, %arg3: memref<16x1xf32, #tpu.memory_space<vmem>>, %arg4: memref<16x1xf32, #tpu.memory_space<vmem>>, %arg5: memref<1x16x2048xbf16, #tpu.memory_space<vmem>>) attributes {dimension_semantics = [#tpu.dimension_semantics<parallel>, #tpu.dimension_semantics<parallel>], iteration_bounds = array<i64: 2, 1>, scalar_prefetch = 0 : i64, scratch_operands = 0 : i64, tpu.core_type = #tpu.core_type<tc>, window_params = [{transform_indices = @transform_0, window_bounds = array<i64: 1, 16, 2048>}, {pipeline_mode = #tpu.pipeline_mode<synchronous>, transform_indices = @transform_1, window_bounds = array<i64: 16, 1>}, {pipeline_mode = #tpu.pipeline_mode<synchronous>, transform_indices = @transform_2, window_bounds = array<i64: 16, 1>}, {transform_indices = @transform_3, window_bounds = array<i64: 1, 16, 2048>}]} {
    %c0 = arith.constant 0 : index
    %c0_0 = arith.constant 0 : index
    %c0_1 = arith.constant 0 : index
    %0 = vector.load %arg2[%c0, %c0_0, %c0_1] : memref<1x16x2048xbf16, #tpu.memory_space<vmem>>, vector<1x16x2048xbf16>
    %1 = vector.shape_cast %0 : vector<1x16x2048xbf16> to vector<16x2048xbf16>
    %2 = arith.extf %1 : vector<16x2048xbf16> to vector<16x2048xf32>
    %c0_2 = arith.constant 0 : index
    %c0_3 = arith.constant 0 : index
    %3 = vector.load %arg3[%c0_2, %c0_3] : memref<16x1xf32, #tpu.memory_space<vmem>>, vector<16x1xf32>
    %4 = vector.broadcast %3 : vector<16x1xf32> to vector<16x2048xf32>
    %5 = arith.mulf %2, %4 : vector<16x2048xf32>
    %c0_4 = arith.constant 0 : index
    %c0_5 = arith.constant 0 : index
    %6 = vector.load %arg4[%c0_4, %c0_5] : memref<16x1xf32, #tpu.memory_space<vmem>>, vector<16x1xf32>
    %7 = vector.broadcast %6 : vector<16x1xf32> to vector<16x2048xf32>
    %8 = arith.addf %5, %7 : vector<16x2048xf32>
    %cst = arith.constant 0.000000e+00 : f32
    %9 = vector.broadcast %cst : f32 to vector<16x2048xf32>
    %10 = arith.maximumf %8, %9 : vector<16x2048xf32>
    %11 = arith.truncf %10 : vector<16x2048xf32> to vector<16x2048xbf16>
    %c0_6 = arith.constant 0 : index
    %c0_7 = arith.constant 0 : index
    %c0_8 = arith.constant 0 : index
    %12 = vector.load %arg5[%c0_6, %c0_7, %c0_8] : memref<1x16x2048xbf16, #tpu.memory_space<vmem>>, vector<1x16x2048xbf16>
    %13 = vector.shape_cast %12 : vector<1x16x2048xbf16> to vector<16x2048xbf16>
    %14 = vector.shape_cast %11 : vector<16x2048xbf16> to vector<1x16x2048xbf16>
    tpu.vector_store %arg5[%c0_6, %c0_7, %c0_8], %14 {strides = array<i32>} : memref<1x16x2048xbf16, #tpu.memory_space<vmem>>, vector<1x16x2048xbf16>,
    return
  }
  func.func @transform_0(%arg0: i32, %arg1: i32) -> (i32, i32, i32) {
    %c0_i32 = arith.constant 0 : i32
    %c0_i32_0 = arith.constant 0 : i32
    return %arg0, %c0_i32, %arg1 : i32, i32, i32
  }
  func.func @transform_1(%arg0: i32, %arg1: i32) -> (i32, i32) {
    %c0_i32 = arith.constant 0 : i32
    %c0_i32_0 = arith.constant 0 : i32
    %c0_i32_1 = arith.constant 0 : i32
    return %c0_i32, %c0_i32_0 : i32, i32
  }
  func.func @transform_2(%arg0: i32, %arg1: i32) -> (i32, i32) {
    %c0_i32 = arith.constant 0 : i32
    %c0_i32_0 = arith.constant 0 : i32
    %c0_i32_1 = arith.constant 0 : i32
    return %c0_i32, %c0_i32_0 : i32, i32
  }
  func.func @transform_3(%arg0: i32, %arg1: i32) -> (i32, i32, i32) {
    %c0_i32 = arith.constant 0 : i32
    %c0_i32_0 = arith.constant 0 : i32
    return %arg0, %c0_i32, %arg1 : i32, i32, i32
  }
}

</mosaic_0001>

<bundles_post_ra>
// kernel: decoder_block.4
= control target key start
LH: loop header
LB: loop body
LE: loop exit
PB: predicated region body
PF: predicated region fallthrough
CT: control target
= control target key end

     0   :  { %s447_s9 = smov 0   ;;  %s493_s0 = inlined_call_operand.vmem [shape: bf16[8,32], index: 0, kind: input, shape index: {}]   ;;  %s494_s1 = inlined_call_operand.vmem [shape: bf16[2,32,640], index: 1, kind: input, shape index: {}]   ;;  %s495_s2 = inlined_call_operand.vmem [shape: f32[2,8,2], index: 2, kind: output, shape index: {}]  }
   0x1 LB: > { %s351_s10 = sadd.s32 4294967295, %s430_s9   ;;  %p355_p0 = scmp.ge.s32.totalorder %s430_s9, 1  ;;  %s430_s9 = sphi %s447_s9, %s12_s9  }
   0x2   : > { %p112_p1 = scmp.lt.s32.totalorder %s430_s9, 3 }
   0x4   : > { %p113_p2 = pnand %p355_p0, %p112_p1 }
   0x5   : > { %p133_p3 = scmp.lt.s32.totalorder (!%p113_p2), %s351_s10, 1 }
   0x6   : > { %116 = sbr.rel (%p113_p2) target bundleno = 295 (0x127), region = 28 }
   0xb   : > { %s497_s10 = smov (!%p133_p3, %s351_s10), 1  ;;  %v143_v29 = vld [vmem:[%s493_s0] sm:$0xf]  ;;  %vm208_vm0 = vcmask 261120   ;;  %vm283_vm1 = vcmask 7168   ;;  %vm296_vm2 = vcmask 15368  }
   0xc   : > { %s415_s11 = smul.u32 80, %s497_s10  ;;  %s357_s17 = sshll.u32 %s497_s10, 3 }
   0xd   : > { %s141_s20 = scalar_lea.vmem %s495_s2, %s357_s17 }
   0xe   : > { %s461_s14 = scalar_lea.vmem %s494_s1, %s415_s11 }
   0xf   : > { %v380_v0 = vld [vmem:[%s461_s14 + $0x28] sm:$0xf]  ;;  %v412_v1 = vld [vmem:[%s461_s14 + $0x38] sm:$0xf0]  ;;  %v410_v2 = vld [vmem:[%s461_s14 + $0x2c] sm:$0xf] }
  0x10   : > { %v381_v3 = vor.u32 %v412_v1, %v380_v0  ;;  %v382_v4 = vld [vmem:[%s461_s14 + $0x3c] sm:$0xf0]  ;;  %v388_v5 = vld [vmem:[%s461_s14 + $0x30] sm:$0xf]  ;;  %v413_v6 = vld [vmem:[%s461_s14 + $0x40] sm:$0xf0] }
  0x11   : > { %v385_v7 = vor.u32 %v410_v2, %v382_v4  ;;  %v389_v8 = vor.u32 %v413_v6, %v388_v5  ;;  %v411_v9 = vld [vmem:[%s461_s14 + $0x34] sm:$0xf]  ;;  %v390_v10 = vld [vmem:[%s461_s14 + $0x44] sm:$0xf0]  ;;  %v360_v11 = vld [vmem:[%s461_s14] sm:$0xf] }
  0x12   : > { %218 = vmatpush.bf16.msra.mxu0 %v381_v3  ;;  %v393_v12 = vor.u32 %v411_v9, %v390_v10  ;;  %v407_v13 = vld [vmem:[%s461_s14 + $0x10] sm:$0xf0]  ;;  %v405_v14 = vld [vmem:[%s461_s14 + $0x4] sm:$0xf]  ;;  %v362_v15 = vld [vmem:[%s461_s14 + $0x14] sm:$0xf0] }
  0x13   : > { %231 = vmatpush.bf16.msra.mxu1 %v385_v7  ;;  %244 = vmatpush.bf16.msra.mxu2 %v389_v8  ;;  %v361_v16 = vor.u32 %v407_v13, %v360_v11  ;;  %v365_v17 = vor.u32 %v405_v14, %v362_v15  ;;  %v368_v18 = vld [vmem:[%s461_s14 + $0x8] sm:$0xf]  ;;  %v408_v19 = vld [vmem:[%s461_s14 + $0x18] sm:$0xf0]  ;;  %v406_v20 = vld [vmem:[%s461_s14 + $0xc] sm:$0xf] }
  0x14   : > { %257 = vmatpush.bf16.msra.mxu3 %v393_v12  ;;  %v369_v21 = vor.u32 %v408_v19, %v368_v18  ;;  %v370_v22 = vld [vmem:[%s461_s14 + $0x1c] sm:$0xf0]  ;;  %v396_v23 = vld [vmem:[%s461_s14 + $0x38] sm:$0xf]  ;;  %v414_v24 = vld [vmem:[%s461_s14 + $0x48] sm:$0xf0] }
  0x15   : > { %v373_v25 = vor.u32 %v406_v20, %v370_v22  ;;  %v397_v26 = vor.u32 %v414_v24, %v396_v23  ;;  %v376_v27 = vld [vmem:[%s461_s14 + $0x10] sm:$0xf]  ;;  %v409_v28 = vld [vmem:[%s461_s14 + $0x20] sm:$0xf0] }
  0x16   : > { %219 = vmatpush.bf16.msra.mxu0 %v361_v16  ;;  %v377_v30 = vor.u32 %v409_v28, %v376_v27 }
  0x17   : > { %232 = vmatpush.bf16.msra.mxu1 %v365_v17  ;;  %245 = vmatpush.bf16.msra.mxu2 %v369_v21 }
  0x18   : > { %258 = vmatpush.bf16.msra.mxu3 %v373_v25 }
  0x19   : > { %398 = vmatmul.msk.bf16.vlgmr.msra.gmra.mxu0 %vm208_vm0, %v143_v29 }
  0x1a   : > { %270 = vmatpush.bf16.msrb.mxu0 %v397_v26  ;;  %399 = vmatmul.msk.bf16.vlgmr.msra.gmra.mxu1 %vm208_vm0, %v143_v29 }
  0x1b   : > { %400 = vmatmul.msk.bf16.vlgmr.msra.gmra.mxu2 %vm208_vm0, %v143_v29  ;;  %401 = vmatmul.msk.bf16.vlgmr.msra.gmra.mxu3 %vm208_vm0, %v143_v29 }
  0x1e   : > { %271 = vmatpush.bf16.msrb.mxu0 %v377_v30 }
  0x29   : > { %402 = vmatmul.msk.bf16.vlgmr.msrb.gmra.mxu0 %vm208_vm0, %v143_v29 }
  0x96   : > { %v221_v31 = vpop.f32.mrf.mxu0 }
  0x97   : > { %v234_v32 = vpop.f32.mrf.mxu1  ;;  %v285_v39 = vmul.f32 %v221_v31, %v221_v31 }
  0x98   : > { %v277_v36 = vadd.f32 %v234_v32, %v221_v31  ;;  %v286_v40 = vmul.f32 %v234_v32, %v234_v32 }
  0x9a   : > { %v290_v46 = vadd.f32 %v286_v40, %v285_v39 }
  0x9e   : > { %v247_v33 = vpop.f32.mrf.mxu2  ;;  %v260_v34 = vpop.f32.mrf.mxu3 }
  0x9f   : > { %v223_v35 = vpop.f32.mrf.mxu0  ;;  %v236_v37 = vpop.f32.mrf.mxu1  ;;  %v278_v38 = vadd.f32 %v277_v36, %v247_v33  ;;  %v287_v41 = vmul.f32 %v247_v33, %v247_v33  ;;  %v288_v49 = vmul.f32 %v260_v34, %v260_v34 }
  0xa1   : > { %v279_v42 = vadd.f32 %v278_v38, %v260_v34  ;;  %v291_v48 = vadd.f32 %v290_v46, %v287_v41 }
  0xa3   : > { %v292_v51 = vadd.f32 %v291_v48, %v288_v49 }
  0xa6   : > { %v249_v43 = vpop.f32.mrf.mxu2  ;;  %v262_v44 = vpop.f32.mrf.mxu3 }
  0xa7   : > { %v273_v45 = vpop.f32.mrf.mxu0 }
  0xa8   : > { %v280_v47 = vadd.f32 %v279_v42, %v273_v45  ;;  %v289_v50 = vmul.f32 %v273_v45, %v273_v45 }
  0xaa   : > { %281 = vadd.xlane.f32.xlu0 %v280_v47  ;;  %v293_v53 = vadd.f32 %v292_v51, %v289_v50 }
  0xaf   : > { %v275_v52 = vpop.f32.mrf.mxu0 }
  0xb2   : > { %294 = vadd.xlane.f32.xlu0 %v293_v53 }
 0x11d   : > { %v282_v54 = vpop.xlane.xlu0 %281 }
 0x11e   : > { %284 = vst.msk [vmem:[%s141_s20] sm:$0xff] %vm283_vm1, %v282_v54 }
 0x125   : > { %v295_v55 = vpop.xlane.xlu0 %294 }
 0x126   : > { %297 = vst.msk [vmem:[%s141_s20] sm:$0xff] %vm296_vm2, %v295_v55 }
 0x127 PF: > { %s12_s9 = sadd.s32 1, %s430_s9  }
 0x128   : > { %p9_p4 = scmp.ge.s32.totalorder %s12_s9, 4  }
 0x12a   :  { %11 = sbr.rel (!%p9_p4) target bundleno = 1 (0x1), region = 58 }

// kernel: decoder_block.6
= control target key start
LH: loop header
LB: loop body
LE: loop exit
PB: predicated region body
PF: predicated region fallthrough
CT: control target
= control target key end

     0   :  { %s1187_s21 = smov 0   ;;  %s1189_s22 = smov 0   ;;  %s1389_s0 = inlined_call_operand.vmem [shape: bf16[2,8,2048], index: 0, kind: input, shape index: {}]   ;;  %s1390_s1 = inlined_call_operand.vmem [shape: f32[8,1], index: 1, kind: input, shape index: {}]   ;;  %s1391_s2 = inlined_call_operand.vmem [shape: f32[8,1], index: 2, kind: input, shape index: {}]   ;;  %s1392_s3 = inlined_call_operand.vmem [shape: bf16[16,8], index: 3, kind: input, shape index: {}]   ;;  %s1393_s4 = inlined_call_operand.vmem [shape: f32[1,2048], index: 4, kind: input, shape index: {}]   ;;  %s1394_s5 = inlined_call_operand.vmem [shape: bf16[2,16,2048], index: 5, kind: output, shape index: {0}]   ;;  %s1395_s6 = inlined_call_operand.vmem [shape: f32[2,16,2], index: 6, kind: output, shape index: {1}]  }
   0x1   :  { %s1191_s23 = smov 0  }
   0x2 LB: > { %s29_s24 = sadd.s32 1, %s1144_s22  ;;  %p1066_p0 = scmp.ge.s32.totalorder %s1148_s23, 1  ;;  %s1148_s23 = sphi %s1191_s23, %s17_s23   ;;  %s1144_s22 = sphi %s1189_s22, %s1397_s22   ;;  %s1140_s21 = sphi %s1187_s21, %s1396_s21  }
   0x3   : > { %p31_p1 = scmp.ge.s32.totalorder %s29_s24, 2  ;;  %p246_p2 = scmp.lt.s32.totalorder %s1148_s23, 3 }
   0x5   : > { %s1399_s24 = smov (%p31_p1, %s29_s24), 0  ;;  %p247_p3 = pnand %p1066_p0, %p246_p2 }
   0x6   : > { %p294_p4 = scmp.lt.s32.totalorder (!%p247_p3), %s1140_s21, 1 }
   0x7   : > { %250 = sbr.rel (%p247_p3) target bundleno = 473 (0x1d9), region = 40 }
   0xc   : > { %v348_v0 = vld [vmem:[%s1390_s1] sm:$0xff]  ;;  %v1150_v1 = vmov 0   ;;  %s1401_s21 = smov (!%p294_p4, %s1140_s21), 1  ;;  %vm435_vm0 = vcmask 1043456   ;;  %vm431_vm1 = vcmask 64512   ;;  %vm812_vm2 = vcmask 15360  }
   0xd   : > { %1125 = vset.pattern.permute.xlu0 %v1150_v1  ;;  %v370_v2 = vld [vmem:[%s1391_s2] sm:$0xff]  ;;  %s1095_s29 = sshll.u32 %s1401_s21, 6  ;;  %s1096_s13 = sshll.u32 %s1401_s21, 7  ;;  %vm853_vm3 = vcmask 7168   ;;  %vm926_vm4 = vcmask 15368  }
   0xe   : > { %351 = vperm.xlu0 %1125, %v348_v0   ;;  %s1217_s8 = scalar_lea.vmem %s1389_s0, %s1095_s29  ;;  %s1327_s16 = scalar_lea.vmem %s1394_s5, %s1096_s13 }
   0xf   : > { %v324_v3 = vld [vmem:[%s1217_s8] sm:$0xff]  ;;  %v325_v4 = vld [vmem:[%s1217_s8 + $0x8] sm:$0xff]  ;;  %v326_v6 = vld [vmem:[%s1217_s8 + $0x10] sm:$0xff]  ;;  %s1097_s19 = sshll.u32 %s1401_s21, 4 }
  0x10   : > { %v327_v7 = vld [vmem:[%s1217_s8 + $0x18] sm:$0xff]  ;;  %v328_v8 = vld [vmem:[%s1217_s8 + $0x20] sm:$0xff]  ;;  %v329_v9 = vld [vmem:[%s1217_s8 + $0x28] sm:$0xff]  ;;  %v332_v10 = vunpack.c.l.bf16 %v324_v3  ;;  %v333_v11 = vunpack.c.h.bf16 %v324_v3  ;;  %v334_v12 = vunpack.c.l.bf16 %v325_v4  ;;  %v335_v13 = vunpack.c.h.bf16 %v325_v4  ;;  %s1357_s26 = scalar_lea.vmem %s1395_s6, %s1097_s19 }
  0x11   : > { %v336_v14 = vunpack.c.l.bf16 %v326_v6  ;;  %v337_v15 = vunpack.c.h.bf16 %v326_v6  ;;  %v338_v16 = vunpack.c.l.bf16 %v327_v7  ;;  %v339_v17 = vunpack.c.h.bf16 %v327_v7  ;;  %v330_v63 = vld [vmem:[%s1217_s8 + $0x30] sm:$0xff]  ;;  %v1261_v4 = vld [vmem:[%s1392_s3] sm:$0xff] }
  0x12   : > { %v340_v18 = vunpack.c.l.bf16 %v328_v8  ;;  %v341_v19 = vunpack.c.h.bf16 %v328_v8  ;;  %v342_v20 = vunpack.c.l.bf16 %v329_v9  ;;  %v343_v21 = vunpack.c.h.bf16 %v329_v9  ;;  %v331_v9 = vld [vmem:[%s1217_s8 + $0x38] sm:$0xff] }
  0x16   : > { %373 = vperm.xlu0 %1125, %v370_v2  }
  0x80   : > { %v1221_v5 = vpop.permute.xlu0 %351 }
  0x81   : > { %v354_v22 = vmul.f32 %v1221_v5, %v332_v10  ;;  %v355_v23 = vmul.f32 %v1221_v5, %v333_v11  ;;  %v356_v24 = vmul.f32 %v1221_v5, %v334_v12  ;;  %v357_v25 = vmul.f32 %v1221_v5, %v335_v13 }
  0x82   : > { %v358_v26 = vmul.f32 %v1221_v5, %v336_v14  ;;  %v359_v27 = vmul.f32 %v1221_v5, %v337_v15  ;;  %v360_v28 = vmul.f32 %v1221_v5, %v338_v16  ;;  %v361_v29 = vmul.f32 %v1221_v5, %v339_v17 }
  0x83   : > { %v362_v31 = vmul.f32 %v1221_v5, %v340_v18  ;;  %v363_v32 = vmul.f32 %v1221_v5, %v341_v19  ;;  %v364_v33 = vmul.f32 %v1221_v5, %v342_v20  ;;  %v365_v34 = vmul.f32 %v1221_v5, %v343_v21 }
  0x84   : > { %v344_v11 = vunpack.c.l.bf16 %v330_v63  ;;  %v345_v15 = vunpack.c.h.bf16 %v330_v63  ;;  %v346_v17 = vunpack.c.l.bf16 %v331_v9  ;;  %v347_v18 = vunpack.c.h.bf16 %v331_v9 }
  0x88   : > { %v1235_v30 = vpop.permute.xlu0 %373 }
  0x89   : > { %v376_v35 = vadd.f32 %v1235_v30, %v354_v22  ;;  %v377_v36 = vadd.f32 %v1235_v30, %v355_v23  ;;  %v378_v37 = vadd.f32 %v1235_v30, %v356_v24  ;;  %v379_v38 = vadd.f32 %v1235_v30, %v357_v25 }
  0x8a   : > { %v380_v39 = vadd.f32 %v1235_v30, %v358_v26  ;;  %v381_v40 = vadd.f32 %v1235_v30, %v359_v27  ;;  %v382_v41 = vadd.f32 %v1235_v30, %v360_v28  ;;  %v383_v42 = vadd.f32 %v1235_v30, %v361_v29 }
  0x8b   : > { %v392_v43 = vmax.f32 %v376_v35, 0.0  ;;  %v393_v44 = vmax.f32 %v377_v36, 0.0  ;;  %v394_v45 = vmax.f32 %v378_v37, 0.0  ;;  %v395_v46 = vmax.f32 %v379_v38, 0.0 }
  0x8c   : > { %v396_v47 = vmax.f32 %v380_v39, 0.0  ;;  %v397_v48 = vmax.f32 %v381_v40, 0.0  ;;  %v398_v49 = vmax.f32 %v382_v41, 0.0  ;;  %v399_v50 = vmax.f32 %v383_v42, 0.0 }
  0x8d   : > { %v410_v51 = vpack.c.bf16 %v392_v43, %v392_v43  ;;  %v411_v52 = vpack.c.bf16 %v393_v44, %v393_v44  ;;  %v412_v53 = vpack.c.bf16 %v394_v45, %v394_v45  ;;  %v413_v54 = vpack.c.bf16 %v395_v46, %v395_v46  ;;  %v1319_v46 = vld [vmem:[%s1393_s4] sm:$0xff] }
  0x8e   : > { %v414_v55 = vpack.c.bf16 %v396_v47, %v396_v47  ;;  %v415_v56 = vpack.c.bf16 %v397_v48, %v397_v48  ;;  %v416_v57 = vpack.c.bf16 %v398_v49, %v398_v49  ;;  %v417_v58 = vpack.c.bf16 %v399_v50, %v399_v50 }
  0x8f   : > { %v437_v59 = vsel %vm435_vm0, %v410_v51, 0  ;;  %v440_v60 = vsel %vm435_vm0, %v411_v52, 0  ;;  %v443_v61 = vsel %vm435_vm0, %v412_v53, 0  ;;  %v446_v62 = vsel %vm435_vm0, %v413_v54, 0 }
  0x90   : > { %491 = vmatpush.bf16.msra.mxu0 %v437_v59  ;;  %505 = vmatpush.bf16.msra.mxu1 %v440_v60  ;;  %v449_v0 = vsel %vm435_vm0, %v414_v55, 0  ;;  %v452_v1 = vsel %vm435_vm0, %v415_v56, 0  ;;  %v455_v2 = vsel %vm435_vm0, %v416_v57, 0  ;;  %v458_v3 = vsel %vm435_vm0, %v417_v58, 0 }
  0x91   : > { %519 = vmatpush.bf16.msra.mxu2 %v443_v61  ;;  %533 = vmatpush.bf16.msra.mxu3 %v446_v62  ;;  %v384_v6 = vadd.f32 %v1235_v30, %v362_v31  ;;  %v385_v7 = vadd.f32 %v1235_v30, %v363_v32  ;;  %v386_v8 = vadd.f32 %v1235_v30, %v364_v33  ;;  %v712_v47 = vperm.slane %v1319_v46, 0 }
  0x92   : > { %v387_v10 = vadd.f32 %v1235_v30, %v365_v34  ;;  %v366_v25 = vmul.f32 %v1221_v5, %v344_v11  ;;  %v367_v26 = vmul.f32 %v1221_v5, %v345_v15  ;;  %v368_v29 = vmul.f32 %v1221_v5, %v346_v17 }
  0x93   : > { %v400_v12 = vmax.f32 %v384_v6, 0.0  ;;  %v401_v13 = vmax.f32 %v385_v7, 0.0  ;;  %v402_v14 = vmax.f32 %v386_v8, 0.0  ;;  %1077 = vmatmul.msk.bf16.vlgmr.msra.gmra.mxu0 %vm431_vm1, %v1261_v4  ;;  %1078 = vmatmul.msk.bf16.vlgmr.msra.gmra.mxu1 %vm431_vm1, %v1261_v4  ;;  %v369_v31 = vmul.f32 %v1221_v5, %v347_v18 }
  0x94   : > { %547 = vmatpush.bf16.msrb.mxu0 %v449_v0  ;;  %561 = vmatpush.bf16.msrb.mxu1 %v452_v1  ;;  %v403_v16 = vmax.f32 %v387_v10, 0.0  ;;  %v388_v32 = vadd.f32 %v1235_v30, %v366_v25  ;;  %v389_v33 = vadd.f32 %v1235_v30, %v367_v26  ;;  %v390_v34 = vadd.f32 %v1235_v30, %v368_v29 }
  0x95   : > { %575 = vmatpush.bf16.msrb.mxu2 %v455_v2  ;;  %589 = vmatpush.bf16.msrb.mxu3 %v458_v3  ;;  %v418_v19 = vpack.c.bf16 %v400_v12, %v400_v12  ;;  %v419_v20 = vpack.c.bf16 %v401_v13, %v401_v13  ;;  %v420_v21 = vpack.c.bf16 %v402_v14, %v402_v14  ;;  %v713_v48 = vperm.slane %v1319_v46, 1 }
  0x96   : > { %1079 = vmatmul.msk.bf16.vlgmr.msra.gmra.mxu2 %vm431_vm1, %v1261_v4  ;;  %1080 = vmatmul.msk.bf16.vlgmr.msra.gmra.mxu3 %vm431_vm1, %v1261_v4  ;;  %v421_v22 = vpack.c.bf16 %v403_v16, %v403_v16  ;;  %v391_v35 = vadd.f32 %v1235_v30, %v369_v31  ;;  %v404_v36 = vmax.f32 %v388_v32, 0.0  ;;  %v405_v37 = vmax.f32 %v389_v33, 0.0 }
  0x97   : > { %v461_v23 = vsel %vm435_vm0, %v418_v19, 0  ;;  %v464_v24 = vsel %vm435_vm0, %v419_v20, 0  ;;  %v467_v27 = vsel %vm435_vm0, %v420_v21, 0  ;;  %v406_v38 = vmax.f32 %v390_v34, 0.0 }
  0x98   : > { %603 = vmatpush.bf16.msra.mxu0 %v461_v23  ;;  %617 = vmatpush.bf16.msra.mxu1 %v464_v24  ;;  %v470_v28 = vsel %vm435_vm0, %v421_v22, 0  ;;  %v407_v39 = vmax.f32 %v391_v35, 0.0  ;;  %v422_v40 = vpack.c.bf16 %v404_v36, %v404_v36  ;;  %v423_v41 = vpack.c.bf16 %v405_v37, %v405_v37 }
  0x99   : > { %631 = vmatpush.bf16.msra.mxu2 %v467_v27  ;;  %645 = vmatpush.bf16.msra.mxu3 %v470_v28  ;;  %v424_v42 = vpack.c.bf16 %v406_v38, %v406_v38  ;;  %v714_v54 = vperm.slane %v1319_v46, 2  ;;  %v715_v55 = vperm.slane %v1319_v46, 3  ;;  %v716_v2 = vperm.slane %v1319_v46, 4 }
  0x9a   : > { %v425_v43 = vpack.c.bf16 %v407_v39, %v407_v39  ;;  %v473_v5 = vsel %vm435_vm0, %v422_v40, 0  ;;  %v476_v30 = vsel %vm435_vm0, %v423_v41, 0  ;;  %v717_v3 = vperm.slane %v1319_v46, 5  ;;  %v1343_v41 = vld [vmem:[%s1393_s4 + $0x8] sm:$0xff] }
  0x9b   : > { %v479_v44 = vsel %vm435_vm0, %v424_v42, 0  ;;  %v718_v20 = vperm.slane %v1319_v46, 6  ;;  %v719_v21 = vperm.slane %v1319_v46, 7  ;;  %v720_v46 = vperm.slane %v1343_v41, 0 }
  0x9c   : > { %v482_v45 = vsel %vm435_vm0, %v425_v43, 0 }
  0xa3   : > { %1081 = vmatmul.msk.bf16.vlgmr.msrb.gmra.mxu0 %vm431_vm1, %v1261_v4  ;;  %1082 = vmatmul.msk.bf16.vlgmr.msrb.gmra.mxu1 %vm431_vm1, %v1261_v4 }
  0xa4   : > { %659 = vmatpush.bf16.msrb.mxu0 %v473_v5  ;;  %673 = vmatpush.bf16.msrb.mxu1 %v476_v30 }
  0xa6   : > { %1083 = vmatmul.msk.bf16.vlgmr.msrb.gmra.mxu2 %vm431_vm1, %v1261_v4  ;;  %1084 = vmatmul.msk.bf16.vlgmr.msrb.gmra.mxu3 %vm431_vm1, %v1261_v4 }
  0xa7   : > { %687 = vmatpush.bf16.msrb.mxu2 %v479_v44  ;;  %701 = vmatpush.bf16.msrb.mxu3 %v482_v45 }
  0xb3   : > { %1085 = vmatmul.msk.bf16.vlgmr.msra.gmra.mxu0 %vm431_vm1, %v1261_v4  ;;  %1086 = vmatmul.msk.bf16.vlgmr.msra.gmra.mxu1 %vm431_vm1, %v1261_v4 }
  0xb6   : > { %1087 = vmatmul.msk.bf16.vlgmr.msra.gmra.mxu2 %vm431_vm1, %v1261_v4  ;;  %1088 = vmatmul.msk.bf16.vlgmr.msra.gmra.mxu3 %vm431_vm1, %v1261_v4 }
  0xc3   : > { %1089 = vmatmul.msk.bf16.vlgmr.msrb.gmra.mxu0 %vm431_vm1, %v1261_v4  ;;  %1090 = vmatmul.msk.bf16.vlgmr.msrb.gmra.mxu1 %vm431_vm1, %v1261_v4 }
  0xc6   : > { %1091 = vmatmul.msk.bf16.vlgmr.msrb.gmra.mxu2 %vm431_vm1, %v1261_v4  ;;  %1092 = vmatmul.msk.bf16.vlgmr.msrb.gmra.mxu3 %vm431_vm1, %v1261_v4 }
 0x110   : > { %v493_v49 = vpop.f32.mrf.mxu0  ;;  %v507_v50 = vpop.f32.mrf.mxu1 }
 0x111   : > { %v744_v51 = vmul.f32 %v712_v47, %v493_v49  ;;  %v745_v52 = vmul.f32 %v713_v48, %v507_v50 }
 0x113   : > { %v776_v53 = vpack.c.bf16 %v745_v52, %v744_v51  ;;  %v858_v7 = vmul.f32 %v744_v51, %v744_v51  ;;  %v859_v8 = vmul.f32 %v745_v52, %v745_v52  ;;  %v817_v17 = vadd.f32 %v745_v52, %v744_v51 }
 0x115   : > { %792 = vst [vmem:[%s1327_s16] sm:$0xff] %v776_v53  ;;  %v890_v19 = vadd.f32 %v859_v8, %v858_v7  ;;  %v722_v8 = vperm.slane %v1343_v41, 2 }
 0x118   : > { %v495_v60 = vpop.f32.mrf.mxu0  ;;  %v509_v61 = vpop.f32.mrf.mxu1 }
 0x119   : > { %v521_v56 = vpop.f32.mrf.mxu2  ;;  %v535_v57 = vpop.f32.mrf.mxu3  ;;  %v760_v62 = vmul.f32 %v712_v47, %v495_v60  ;;  %v761_v63 = vmul.f32 %v713_v48, %v509_v61  ;;  %v721_v47 = vperm.slane %v1343_v41, 1 }
 0x11a   : > { %v746_v58 = vmul.f32 %v714_v54, %v521_v56  ;;  %v747_v59 = vmul.f32 %v715_v55, %v535_v57 }
 0x11b   : > { %v784_v1 = vpack.c.bf16 %v761_v63, %v760_v62  ;;  %v834_v34 = vadd.f32 %v761_v63, %v760_v62  ;;  %v874_v38 = vmul.f32 %v760_v62, %v760_v62  ;;  %v875_v39 = vmul.f32 %v761_v63, %v761_v63 }
 0x11c   : > { %v777_v0 = vpack.c.bf16 %v747_v59, %v746_v58  ;;  %v860_v15 = vmul.f32 %v746_v58, %v746_v58  ;;  %v818_v22 = vadd.f32 %v817_v17, %v746_v58  ;;  %v861_v24 = vmul.f32 %v747_v59, %v747_v59 }
 0x11d   : > { %800 = vst [vmem:[%s1327_s16 + $0x40] sm:$0xff] %v784_v1  ;;  %v907_v48 = vadd.f32 %v875_v39, %v874_v38  ;;  %v724_v39 = vperm.slane %v1343_v41, 4 }
 0x11e   : > { %793 = vst [vmem:[%s1327_s16 + $0x8] sm:$0xff] %v777_v0  ;;  %v891_v23 = vadd.f32 %v890_v19, %v860_v15  ;;  %v819_v33 = vadd.f32 %v818_v22, %v747_v59 }
 0x120   : > { %v549_v11 = vpop.f32.mrf.mxu0  ;;  %v563_v12 = vpop.f32.mrf.mxu1  ;;  %v892_v37 = vadd.f32 %v891_v23, %v861_v24 }
 0x121   : > { %v523_v4 = vpop.f32.mrf.mxu2  ;;  %v537_v6 = vpop.f32.mrf.mxu3  ;;  %v748_v13 = vmul.f32 %v716_v2, %v549_v11  ;;  %v749_v14 = vmul.f32 %v717_v3, %v563_v12 }
 0x122   : > { %v762_v9 = vmul.f32 %v714_v54, %v523_v4  ;;  %v763_v10 = vmul.f32 %v715_v55, %v537_v6 }
 0x123   : > { %v778_v18 = vpack.c.bf16 %v749_v14, %v748_v13  ;;  %v862_v27 = vmul.f32 %v748_v13, %v748_v13  ;;  %v820_v43 = vadd.f32 %v819_v33, %v748_v13  ;;  %v863_v45 = vmul.f32 %v749_v14, %v749_v14 }
 0x124   : > { %v785_v16 = vpack.c.bf16 %v763_v10, %v762_v9  ;;  %v835_v42 = vadd.f32 %v834_v34, %v762_v9  ;;  %v876_v30 = vmul.f32 %v762_v9, %v762_v9  ;;  %v877_v0 = vmul.f32 %v763_v10, %v763_v10 }
 0x125   : > { %794 = vst [vmem:[%s1327_s16 + $0x10] sm:$0xff] %v778_v18  ;;  %v893_v44 = vadd.f32 %v892_v37, %v862_v27  ;;  %v821_v50 = vadd.f32 %v820_v43, %v749_v14  ;;  %v723_v9 = vperm.slane %v1343_v41, 3 }
 0x126   : > { %801 = vst [vmem:[%s1327_s16 + $0x48] sm:$0xff] %v785_v16  ;;  %v836_v49 = vadd.f32 %v835_v42, %v763_v10  ;;  %v908_v54 = vadd.f32 %v907_v48, %v876_v30 }
 0x127   : > { %v894_v55 = vadd.f32 %v893_v44, %v863_v45 }
 0x128   : > { %v551_v31 = vpop.f32.mrf.mxu0  ;;  %v565_v32 = vpop.f32.mrf.mxu1  ;;  %v909_v7 = vadd.f32 %v908_v54, %v877_v0 }
 0x129   : > { %v577_v25 = vpop.f32.mrf.mxu2  ;;  %v591_v26 = vpop.f32.mrf.mxu3  ;;  %v764_v35 = vmul.f32 %v716_v2, %v551_v31  ;;  %v765_v36 = vmul.f32 %v717_v3, %v565_v32 }
 0x12a   : > { %v750_v28 = vmul.f32 %v718_v20, %v577_v25  ;;  %v751_v29 = vmul.f32 %v719_v21, %v591_v26 }
 0x12b   : > { %v786_v5 = vpack.c.bf16 %v765_v36, %v764_v35  ;;  %v837_v61 = vadd.f32 %v836_v49, %v764_v35  ;;  %v878_v1 = vmul.f32 %v764_v35, %v764_v35  ;;  %v879_v15 = vmul.f32 %v765_v36, %v765_v36 }
 0x12c   : > { %v779_v40 = vpack.c.bf16 %v751_v29, %v750_v28  ;;  %v864_v51 = vmul.f32 %v750_v28, %v750_v28  ;;  %v822_v60 = vadd.f32 %v821_v50, %v750_v28  ;;  %v865_v4 = vmul.f32 %v751_v29, %v751_v29 }
 0x12d   : > { %802 = vst [vmem:[%s1327_s16 + $0x50] sm:$0xff] %v786_v5  ;;  %v838_v12 = vadd.f32 %v837_v61, %v765_v36  ;;  %v910_v14 = vadd.f32 %v909_v7, %v878_v1 }
 0x12e   : > { %795 = vst [vmem:[%s1327_s16 + $0x18] sm:$0xff] %v779_v40  ;;  %v895_v3 = vadd.f32 %v894_v55, %v864_v51  ;;  %v823_v11 = vadd.f32 %v822_v60, %v751_v29  ;;  %v1151_v29 = vmov 0.0   ;;  %v725_v40 = vperm.slane %v1343_v41, 5 }
 0x12f   : > { %813 = vst.msk [vmem:[%s1357_s26] sm:$0xff] %vm812_vm2, %v1151_v29  ;;  %v911_v31 = vadd.f32 %v910_v14, %v879_v15 }
 0x130   : > { %v605_v58 = vpop.f32.mrf.mxu0  ;;  %v619_v59 = vpop.f32.mrf.mxu1  ;;  %v896_v10 = vadd.f32 %v895_v3, %v865_v4  ;;  %814 = vst.msk [vmem:[%s1357_s26 + $0x8] sm:$0xff] %vm812_vm2, %v1151_v29 }
 0x131   : > { %v579_v52 = vpop.f32.mrf.mxu2  ;;  %v593_v53 = vpop.f32.mrf.mxu3  ;;  %v752_v62 = vmul.f32 %v720_v46, %v605_v58  ;;  %v753_v63 = vmul.f32 %v721_v47, %v619_v59 }
 0x132   : > { %v766_v56 = vmul.f32 %v718_v20, %v579_v52  ;;  %v767_v57 = vmul.f32 %v719_v21, %v593_v53 }
 0x133   : > { %v780_v6 = vpack.c.bf16 %v753_v63, %v752_v62  ;;  %v866_v13 = vmul.f32 %v752_v62, %v752_v62  ;;  %v824_v18 = vadd.f32 %v823_v11, %v752_v62  ;;  %v867_v26 = vmul.f32 %v753_v63, %v753_v63 }
 0x134   : > { %v787_v2 = vpack.c.bf16 %v767_v57, %v766_v56  ;;  %v839_v16 = vadd.f32 %v838_v12, %v766_v56  ;;  %v880_v17 = vmul.f32 %v766_v56, %v766_v56  ;;  %v881_v42 = vmul.f32 %v767_v57, %v767_v57 }
 0x135   : > { %796 = vst [vmem:[%s1327_s16 + $0x20] sm:$0xff] %v780_v6  ;;  %v897_v25 = vadd.f32 %v896_v10, %v866_v13  ;;  %v825_v36 = vadd.f32 %v824_v18, %v753_v63 }
 0x136   : > { %803 = vst [vmem:[%s1327_s16 + $0x58] sm:$0xff] %v787_v2  ;;  %v912_v35 = vadd.f32 %v911_v31, %v880_v17  ;;  %v840_v37 = vadd.f32 %v839_v16, %v767_v57  ;;  %v726_v57 = vperm.slane %v1343_v41, 6  ;;  %v727_v2 = vperm.slane %v1343_v41, 7 }
 0x137   : > { %v898_v38 = vadd.f32 %v897_v25, %v867_v26 }
 0x138   : > { %v607_v23 = vpop.f32.mrf.mxu0  ;;  %v621_v24 = vpop.f32.mrf.mxu1  ;;  %v913_v48 = vadd.f32 %v912_v35, %v881_v42 }
 0x139   : > { %v633_v19 = vpop.f32.mrf.mxu2  ;;  %v647_v20 = vpop.f32.mrf.mxu3  ;;  %v768_v27 = vmul.f32 %v720_v46, %v607_v23  ;;  %v769_v28 = vmul.f32 %v721_v47, %v621_v24 }
 0x13a   : > { %v754_v21 = vmul.f32 %v722_v8, %v633_v19  ;;  %v755_v22 = vmul.f32 %v723_v9, %v647_v20 }
 0x13b   : > { %v788_v34 = vpack.c.bf16 %v769_v28, %v768_v27  ;;  %v882_v5 = vmul.f32 %v768_v27, %v768_v27  ;;  %v841_v45 = vadd.f32 %v840_v37, %v768_v27  ;;  %v883_v63 = vmul.f32 %v769_v28, %v769_v28 }
 0x13c   : > { %v781_v32 = vpack.c.bf16 %v755_v22, %v754_v21  ;;  %v868_v33 = vmul.f32 %v754_v21, %v754_v21  ;;  %v826_v43 = vadd.f32 %v825_v36, %v754_v21  ;;  %v869_v44 = vmul.f32 %v755_v22, %v755_v22 }
 0x13d   : > { %804 = vst [vmem:[%s1327_s16 + $0x60] sm:$0xff] %v788_v34  ;;  %v914_v56 = vadd.f32 %v913_v48, %v882_v5  ;;  %v842_v60 = vadd.f32 %v841_v45, %v769_v28 }
 0x13e   : > { %797 = vst [vmem:[%s1327_s16 + $0x28] sm:$0xff] %v781_v32  ;;  %v899_v30 = vadd.f32 %v898_v38, %v868_v33  ;;  %v827_v55 = vadd.f32 %v826_v43, %v755_v22 }
 0x13f   : > { %v915_v7 = vadd.f32 %v914_v56, %v883_v63 }
 0x140   : > { %v661_v51 = vpop.f32.mrf.mxu0  ;;  %v675_v52 = vpop.f32.mrf.mxu1  ;;  %v900_v59 = vadd.f32 %v899_v30, %v869_v44 }
 0x141   : > { %v635_v46 = vpop.f32.mrf.mxu2  ;;  %v649_v47 = vpop.f32.mrf.mxu3  ;;  %v756_v53 = vmul.f32 %v724_v39, %v661_v51  ;;  %v757_v54 = vmul.f32 %v725_v40, %v675_v52 }
 0x142   : > { %v770_v49 = vmul.f32 %v722_v8, %v635_v46  ;;  %v771_v50 = vmul.f32 %v723_v9, %v649_v47  ;;  %v815_v46 = vld [vmem:[%s1357_s26] sm:$0xff] }
 0x143   : > { %v870_v61 = vmul.f32 %v756_v53, %v756_v53  ;;  %v782_v62 = vpack.c.bf16 %v757_v54, %v756_v53  ;;  %v828_v1 = vadd.f32 %v827_v55, %v756_v53  ;;  %v871_v4 = vmul.f32 %v757_v54, %v757_v54 }
 0x144   : > { %v789_v58 = vpack.c.bf16 %v771_v50, %v770_v49  ;;  %v884_v0 = vmul.f32 %v770_v49, %v770_v49  ;;  %v843_v3 = vadd.f32 %v842_v60, %v770_v49  ;;  %v885_v8 = vmul.f32 %v771_v50, %v771_v50  ;;  %v816_v49 = vld [vmem:[%s1357_s26 + $0x8] sm:$0xff] }
 0x145   : > { %798 = vst [vmem:[%s1327_s16 + $0x30] sm:$0xff] %v782_v62  ;;  %v901_v6 = vadd.f32 %v900_v59, %v870_v61  ;;  %v829_v16 = vadd.f32 %v828_v1, %v757_v54 }
 0x146   : > { %805 = vst [vmem:[%s1327_s16 + $0x68] sm:$0xff] %v789_v58  ;;  %v916_v12 = vadd.f32 %v915_v7, %v884_v0  ;;  %v844_v17 = vadd.f32 %v843_v3, %v771_v50 }
 0x147   : > { %v902_v41 = vadd.f32 %v901_v6, %v871_v4 }
 0x148   : > { %v663_v15 = vpop.f32.mrf.mxu0  ;;  %v677_v10 = vpop.f32.mrf.mxu1  ;;  %v917_v26 = vadd.f32 %v916_v12, %v885_v8 }
 0x149   : > { %v689_v9 = vpop.f32.mrf.mxu2  ;;  %v703_v11 = vpop.f32.mrf.mxu3  ;;  %v772_v18 = vmul.f32 %v724_v39, %v663_v15  ;;  %v773_v19 = vmul.f32 %v725_v40, %v677_v10 }
 0x14a   : > { %v758_v13 = vmul.f32 %v726_v57, %v689_v9  ;;  %v759_v14 = vmul.f32 %v727_v2, %v703_v11 }
 0x14b   : > { %v886_v24 = vmul.f32 %v772_v18, %v772_v18  ;;  %v790_v25 = vpack.c.bf16 %v773_v19, %v772_v18  ;;  %v845_v27 = vadd.f32 %v844_v17, %v772_v18  ;;  %v887_v36 = vmul.f32 %v773_v19, %v773_v19 }
 0x14c   : > { %v783_v20 = vpack.c.bf16 %v759_v14, %v758_v13  ;;  %v830_v21 = vadd.f32 %v829_v16, %v758_v13  ;;  %v872_v22 = vmul.f32 %v758_v13, %v758_v13  ;;  %v873_v23 = vmul.f32 %v759_v14, %v759_v14 }
 0x14d   : > { %806 = vst [vmem:[%s1327_s16 + $0x70] sm:$0xff] %v790_v25  ;;  %v918_v31 = vadd.f32 %v917_v26, %v886_v24  ;;  %v846_v35 = vadd.f32 %v845_v27, %v773_v19 }
 0x14e   : > { %799 = vst [vmem:[%s1327_s16 + $0x38] sm:$0xff] %v783_v20  ;;  %v831_v28 = vadd.f32 %v830_v21, %v759_v14  ;;  %v903_v29 = vadd.f32 %v902_v41, %v872_v22 }
 0x14f   : > { %v919_v43 = vadd.f32 %v918_v31, %v887_v36 }
 0x150   : > { %832 = vadd.xlane.f32.xlu1 %v831_v28  ;;  %v904_v32 = vadd.f32 %v903_v29, %v873_v23 }
 0x151   : > { %v691_v33 = vpop.f32.mrf.mxu2  ;;  %v705_v34 = vpop.f32.mrf.mxu3 }
 0x152   : > { %v774_v37 = vmul.f32 %v726_v57, %v691_v33  ;;  %v775_v38 = vmul.f32 %v727_v2, %v705_v34  ;;  %905 = vadd.xlane.f32.xlu2 %v904_v32 }
 0x154   : > { %v888_v39 = vmul.f32 %v774_v37, %v774_v37  ;;  %v791_v40 = vpack.c.bf16 %v775_v38, %v774_v37  ;;  %v847_v42 = vadd.f32 %v846_v35, %v774_v37  ;;  %v889_v30 = vmul.f32 %v775_v38, %v775_v38 }
 0x156   : > { %807 = vst [vmem:[%s1327_s16 + $0x78] sm:$0xff] %v791_v40  ;;  %v848_v5 = vadd.f32 %v847_v42, %v775_v38  ;;  %v920_v44 = vadd.f32 %v919_v43, %v888_v39 }
 0x158   : > { %849 = vadd.xlane.f32.xlu1 %v848_v5  ;;  %v921_v45 = vadd.f32 %v920_v44, %v889_v30 }
 0x15a   : > { %922 = vadd.xlane.f32.xlu2 %v921_v45 }
 0x1c3   : > { %v833_v47 = vpop.xlane.xlu1 %832 }
 0x1c4   : > { %v851_v48 = vadd.f32 %v833_v47, %v815_v46 }
 0x1c5   : > { %v906_v50 = vpop.xlane.xlu2 %905 }
 0x1c6   : > { %854 = vst.msk [vmem:[%s1357_s26] sm:$0xff] %vm853_vm3, %v851_v48 }
 0x1cb   : > { %v850_v51 = vpop.xlane.xlu1 %849 }
 0x1cc   : > { %v852_v52 = vadd.f32 %v850_v51, %v816_v49 }
 0x1cd   : > { %v856_v53 = vld [vmem:[%s1357_s26] sm:$0xff]  ;;  %v923_v55 = vpop.xlane.xlu2 %922 }
 0x1ce   : > { %v924_v54 = vadd.f32 %v906_v50, %v856_v53  ;;  %855 = vst.msk [vmem:[%s1357_s26 + $0x8] sm:$0xff] %vm853_vm3, %v852_v52 }
 0x1d0   : > { %927 = vst.msk [vmem:[%s1357_s26] sm:$0xff] %vm926_vm4, %v924_v54 }
 0x1d5   : > { %v857_v56 = vld [vmem:[%s1357_s26 + $0x8] sm:$0xff] }
 0x1d6   : > { %v925_v58 = vadd.f32 %v923_v55, %v857_v56 }
 0x1d8   : > { %928 = vst.msk [vmem:[%s1357_s26 + $0x8] sm:$0xff] %vm926_vm4, %v925_v58 }
 0x1d9 PF: > { %s17_s23 = sadd.s32 1, %s1148_s23   ;;  %s1396_s21 = smov %s1144_s22 }
 0x1da   : > { %p14_p5 = scmp.ge.s32.totalorder %s17_s23, 4   ;;  %s1397_s22 = smov %s1399_s24 }
 0x1dc   :  { %16 = sbr.rel (!%p14_p5) target bundleno = 2 (0x2), region = 89 }

// kernel: decoder_block.5
= control target key start
LH: loop header
LB: loop body
LE: loop exit
PB: predicated region body
PF: predicated region fallthrough
CT: control target
= control target key end

     0   :  { %s1006_s24 = smov 0   ;;  %s1147_s0 = inlined_call_operand.vmem [shape: bf16[2,32,640], index: 0, kind: input, shape index: {}]   ;;  %s1148_s1 = inlined_call_operand.vmem [shape: bf16[8,32], index: 1, kind: input, shape index: {}]   ;;  %s1149_s2 = inlined_call_operand.vmem [shape: f32[8,1], index: 2, kind: input, shape index: {}]   ;;  %s1150_s3 = inlined_call_operand.vmem [shape: f32[8,1], index: 3, kind: input, shape index: {}]   ;;  %s1151_s4 = inlined_call_operand.vmem [shape: f32[1,640], index: 4, kind: input, shape index: {}]   ;;  %s1152_s5 = inlined_call_operand.vmem [shape: bf16[32,32], index: 5, kind: input, shape index: {}]   ;;  %s1153_s6 = inlined_call_operand.vmem [shape: bf16[2,8,2048], index: 6, kind: output, shape index: {0}]   ;;  %s1154_s7 = inlined_call_operand.vmem [shape: f32[2,8,2], index: 7, kind: output, shape index: {1}]  }
   0x1 LB: > { %s855_s25 = sadd.s32 4294967295, %s960_s24   ;;  %p859_p0 = scmp.ge.s32.totalorder %s960_s24, 1  ;;  %s960_s24 = sphi %s1006_s24, %s18_s24  }
   0x2   : > { %p240_p1 = scmp.lt.s32.totalorder %s960_s24, 3 }
   0x4   : > { %p241_p2 = pnand %p859_p0, %p240_p1 }
   0x5   : > { %p276_p3 = scmp.lt.s32.totalorder (!%p241_p2), %s855_s25, 1  ;;  %s963_s15 = smov (!%p241_p2), 110  }
   0x6   : > { %244 = sbr.rel (%p241_p2) target bundleno = 601 (0x259), region = 44  ;;  %s964_s16 = smov (!%p241_p2), 111  }
   0x7   : > { %s965_s17 = smov (!%p241_p2), 127  }
   0xb   : > { %v425_v0 = vld [vmem:[%s1149_s2] sm:$0xff]  ;;  %v962_v1 = vmov 0   ;;  %s1156_s25 = smov (!%p276_p3, %s855_s25), 1  ;;  %vm356_vm0 = vcmask 261120   ;;  %vm510_vm1 = vcmask 908288   ;;  %vm530_vm2 = vcmask 1043456  }
   0xc   : > { %953 = vset.pattern.permute.xlu0 %v962_v1  ;;  %s940_s28 = smul.u32 80, %s1156_s25  ;;  %v436_v2 = vld [vmem:[%s1150_s3] sm:$0xff]  ;;  %vm525_vm3 = vcmask 900096   ;;  %vm495_vm4 = vcmask 1039360   ;;  %s927_s26 = sshll.u32 %s1156_s25, 6  ;;  %vm765_vm5 = vcmask 7168  }
   0xd   : > { %428 = vperm.xlu0 %953, %v425_v0   ;;  %v291_v32 = vld [vmem:[%s1148_s1] sm:$0xf]  ;;  %s1118_s29 = scalar_lea.vmem %s1153_s6, %s927_s26  ;;  %s863_s30 = sshll.u32 %s1156_s25, 3  ;;  %vm767_vm6 = vcmask 15368  }
   0xe   : > { %s1023_s8 = scalar_lea.vmem %s1147_s0, %s940_s28  ;;  %v452_v36 = vld [vmem:[%s1151_s4] sm:$0x1f]  ;;  %s289_s10 = scalar_lea.vmem %s1154_s7, %s863_s30 }
   0xf   : > { %v886_v3 = vld [vmem:[%s1023_s8 + $0x28] sm:$0xf]  ;;  %v935_v4 = vld [vmem:[%s1023_s8 + $0x38] sm:$0xf0]  ;;  %v933_v5 = vld [vmem:[%s1023_s8 + $0x2c] sm:$0xf] }
  0x10   : > { %v887_v6 = vor.u32 %v935_v4, %v886_v3  ;;  %v888_v7 = vld [vmem:[%s1023_s8 + $0x3c] sm:$0xf0]  ;;  %v894_v8 = vld [vmem:[%s1023_s8 + $0x30] sm:$0xf]  ;;  %v936_v9 = vld [vmem:[%s1023_s8 + $0x40] sm:$0xf0] }
  0x11   : > { %v891_v10 = vor.u32 %v933_v5, %v888_v7  ;;  %v895_v11 = vor.u32 %v936_v9, %v894_v8  ;;  %v934_v12 = vld [vmem:[%s1023_s8 + $0x34] sm:$0xf]  ;;  %v896_v13 = vld [vmem:[%s1023_s8 + $0x44] sm:$0xf0]  ;;  %v866_v14 = vld [vmem:[%s1023_s8] sm:$0xf] }
  0x12   : > { %366 = vmatpush.bf16.msra.mxu0 %v887_v6  ;;  %v899_v15 = vor.u32 %v934_v12, %v896_v13  ;;  %v930_v16 = vld [vmem:[%s1023_s8 + $0x10] sm:$0xf0]  ;;  %v928_v17 = vld [vmem:[%s1023_s8 + $0x4] sm:$0xf]  ;;  %v868_v18 = vld [vmem:[%s1023_s8 + $0x14] sm:$0xf0] }
  0x13   : > { %379 = vmatpush.bf16.msra.mxu1 %v891_v10  ;;  %392 = vmatpush.bf16.msra.mxu2 %v895_v11  ;;  %v867_v19 = vor.u32 %v930_v16, %v866_v14  ;;  %v871_v20 = vor.u32 %v928_v17, %v868_v18  ;;  %v874_v21 = vld [vmem:[%s1023_s8 + $0x8] sm:$0xf]  ;;  %v931_v22 = vld [vmem:[%s1023_s8 + $0x18] sm:$0xf0]  ;;  %v929_v23 = vld [vmem:[%s1023_s8 + $0xc] sm:$0xf] }
  0x14   : > { %405 = vmatpush.bf16.msra.mxu3 %v899_v15  ;;  %v875_v24 = vor.u32 %v931_v22, %v874_v21  ;;  %v876_v25 = vld [vmem:[%s1023_s8 + $0x1c] sm:$0xf0]  ;;  %v902_v26 = vld [vmem:[%s1023_s8 + $0x38] sm:$0xf]  ;;  %v937_v27 = vld [vmem:[%s1023_s8 + $0x48] sm:$0xf0] }
  0x15   : > { %439 = vperm.xlu0 %953, %v436_v2   ;;  %v879_v28 = vor.u32 %v929_v23, %v876_v25  ;;  %v903_v29 = vor.u32 %v937_v27, %v902_v26  ;;  %v882_v30 = vld [vmem:[%s1023_s8 + $0x10] sm:$0xf]  ;;  %v932_v31 = vld [vmem:[%s1023_s8 + $0x20] sm:$0xf0]  ;;  %v454_v42 = vperm.slane %v452_v36, 0  ;;  %v455_v44 = vperm.slane %v452_v36, 1 }
  0x16   : > { %367 = vmatpush.bf16.msra.mxu0 %v867_v19  ;;  %v883_v33 = vor.u32 %v932_v31, %v882_v30  ;;  %v456_v57 = vperm.slane %v452_v36, 2  ;;  %v457_v59 = vperm.slane %v452_v36, 3  ;;  %v458_v14 = vperm.slane %v452_v36, 4 }
  0x17   : > { %380 = vmatpush.bf16.msra.mxu1 %v871_v20  ;;  %393 = vmatpush.bf16.msra.mxu2 %v875_v24 }
  0x18   : > { %406 = vmatpush.bf16.msra.mxu3 %v879_v28 }
  0x19   : > { %904 = vmatmul.msk.bf16.vlgmr.msra.gmra.mxu0 %vm356_vm0, %v291_v32 }
  0x1a   : > { %418 = vmatpush.bf16.msrb.mxu0 %v903_v29  ;;  %905 = vmatmul.msk.bf16.vlgmr.msra.gmra.mxu1 %vm356_vm0, %v291_v32 }
  0x1b   : > { %906 = vmatmul.msk.bf16.vlgmr.msra.gmra.mxu2 %vm356_vm0, %v291_v32  ;;  %907 = vmatmul.msk.bf16.vlgmr.msra.gmra.mxu3 %vm356_vm0, %v291_v32 }
  0x1e   : > { %419 = vmatpush.bf16.msrb.mxu0 %v883_v33 }
  0x29   : > { %908 = vmatmul.msk.bf16.vlgmr.msrb.gmra.mxu0 %vm356_vm0, %v291_v32 }
  0x7f   : > { %v429_v34 = vpop.permute.xlu0 %428 }
  0x87   : > { %v440_v39 = vpop.permute.xlu0 %439 }
  0x96   : > { %v369_v35 = vpop.f32.mrf.mxu0 }
  0x97   : > { %v431_v37 = vmul.f32 %v429_v34, %v369_v35  ;;  %v382_v38 = vpop.f32.mrf.mxu1 }
  0x98   : > { %v432_v40 = vmul.f32 %v429_v34, %v382_v38 }
  0x99   : > { %v442_v41 = vadd.f32 %v440_v39, %v431_v37 }
  0x9a   : > { %v443_v43 = vadd.f32 %v440_v39, %v432_v40 }
  0x9b   : > { %v447_v45 = vmax.f32 %v442_v41, 0.0  ;;  %v938_v41 = vld [vmem:[%s1152_s5] sm:$0xff] }
  0x9c   : > { %v448_v46 = vmax.f32 %v443_v43, 0.0 }
  0x9d   : > { %v464_v47 = vmul.f32 %v454_v42, %v447_v45 }
  0x9e   : > { %v395_v48 = vpop.f32.mrf.mxu2  ;;  %v465_v49 = vmul.f32 %v455_v44, %v448_v46  ;;  %v408_v51 = vpop.f32.mrf.mxu3 }
  0x9f   : > { %v433_v50 = vmul.f32 %v429_v34, %v395_v48  ;;  %v371_v52 = vpop.f32.mrf.mxu0  ;;  %v434_v53 = vmul.f32 %v429_v34, %v408_v51  ;;  %v384_v54 = vpop.f32.mrf.mxu1 }
  0xa0   : > { %v469_v55 = vpack.c.bf16 %v465_v49, %v464_v47  ;;  %v939_v54 = vld [vmem:[%s1152_s5 + $0x8] sm:$0xff] }
  0xa1   : > { %v444_v56 = vadd.f32 %v440_v39, %v433_v50  ;;  %v445_v58 = vadd.f32 %v440_v39, %v434_v53 }
  0xa2   : > { %v475_v61 = vunpack.c.h.b16 %v469_v55  ;;  %v474_v62 = vunpack.c.l.b16 %v469_v55 }
  0xa3   : > { %v449_v60 = vmax.f32 %v444_v56, 0.0  ;;  %v450_v63 = vmax.f32 %v445_v58, 0.0  ;;  %v659_v58 = vld [vmem:[%s1151_s4] sm:$0xf] }
  0xa4   : > { %v1059_v1 = vpack.c.b16 %v475_v61, %v475_v61  ;;  %v478_v2 = vpack.c.b16 %v474_v62, %v474_v62  ;;  %v662_v61 = vperm.slane %v659_v58, 1 }
  0xa5   : > { %v466_v0 = vmul.f32 %v456_v57, %v449_v60  ;;  %v467_v3 = vmul.f32 %v457_v59, %v450_v63  ;;  %v661_v60 = vperm.slane %v659_v58, 0 }
  0xa6   : > { %v397_v4 = vpop.f32.mrf.mxu2  ;;  %v410_v5 = vpop.f32.mrf.mxu3  ;;  %517 = vrot.lane.b32.xlu2 %v1059_v1, %s963_s15  ;;  %502 = vrot.lane.b32.xlu1 %v1059_v1, %s964_s16 }
  0xa7   : > { %v421_v6 = vpop.f32.mrf.mxu0  ;;  %v470_v7 = vpack.c.bf16 %v467_v3, %v466_v0  ;;  %515 = vrot.lane.b32.xlu0 %v478_v2, %s963_s15 }
  0xa8   : > { %v435_v8 = vmul.f32 %v429_v34, %v421_v6 }
  0xa9   : > { %v476_v10 = vunpack.c.l.b16 %v470_v7  ;;  %v477_v11 = vunpack.c.h.b16 %v470_v7 }
  0xaa   : > { %v446_v9 = vadd.f32 %v440_v39, %v435_v8 }
  0xab   : > { %v1063_v12 = vpack.c.b16 %v476_v10, %v476_v10  ;;  %v1065_v15 = vpack.c.b16 %v477_v11, %v477_v11  ;;  %v1121_v10 = vperm.slane %v659_v58, 2 }
  0xac   : > { %v451_v13 = vmax.f32 %v446_v9, 0.0 }
  0xae   : > { %487 = vrot.lane.b32.xlu2 %v1059_v1, %s965_s17  ;;  %504 = vrot.lane.b32.xlu1 %v1063_v12, %s964_s16  ;;  %v468_v17 = vmul.f32 %v458_v14, %v451_v13 }
  0xaf   : > { %v423_v16 = vpop.f32.mrf.mxu0  ;;  %506 = vrot.lane.b32.xlu0 %v1065_v15, %s964_s16 }
  0xb0   : > { %v471_v18 = vpack.c.bf16 %v468_v17, %v468_v17 }
  0xb2   : > { %v483_v19 = vunpack.c.l.b16 %v471_v18 }
  0xb4   : > { %v484_v20 = vpack.c.b16 %v483_v19, %v483_v19 }
  0xb6   : > { %519 = vrot.lane.b32.xlu2 %v1063_v12, %s963_s15  ;;  %485 = vrot.lane.b32.xlu1 %v478_v2, %s965_s17 }
  0xb7   : > { %489 = vrot.lane.b32.xlu0 %v1063_v12, %s965_s17 }
  0xbe   : > { %521 = vrot.lane.b32.xlu1 %v1065_v15, %s963_s15  ;;  %500 = vrot.lane.b32.xlu2 %v478_v2, %s964_s16 }
  0xbf   : > { %523 = vrot.lane.b32.xlu0 %v484_v20, %s963_s15 }
  0xc6   : > { %491 = vrot.lane.b32.xlu1 %v1065_v15, %s965_s17  ;;  %508 = vrot.lane.b32.xlu2 %v484_v20, %s964_s16 }
  0xce   : > { %493 = vrot.lane.b32.xlu1 %v484_v20, %s965_s17 }
 0x100   : > { %v518_v21 = vpop.permute.xlu2 %517 }
 0x108   : > { %v488_v22 = vpop.permute.xlu2 %487 }
 0x110   : > { %v520_v23 = vpop.permute.xlu2 %519 }
 0x111   : > { %v527_v31 = vsel %vm525_vm3, %v518_v21, %v520_v23 }
 0x118   : > { %v503_v24 = vpop.permute.xlu1 %502  ;;  %v501_v25 = vpop.permute.xlu2 %500 }
 0x119   : > { %v516_v26 = vpop.permute.xlu0 %515  ;;  %v511_v27 = vsel %vm510_vm1, %v501_v25, %v503_v24 }
 0x11a   : > { %v526_v28 = vsel %vm525_vm3, %v516_v26, %v518_v21 }
 0x11b   : > { %v549_v29 = vsel %vm530_vm2, %v511_v27, %v526_v28 }
 0x11c   : > { %589 = vmatpush.bf16.msrb.mxu1 %v549_v29 }
 0x120   : > { %v505_v30 = vpop.permute.xlu1 %504  ;;  %v509_v42 = vpop.permute.xlu2 %508 }
 0x121   : > { %v512_v32 = vsel %vm510_vm1, %v503_v24, %v505_v30  ;;  %v507_v33 = vpop.permute.xlu0 %506 }
 0x122   : > { %v553_v34 = vsel %vm530_vm2, %v512_v32, %v527_v31  ;;  %v513_v44 = vsel %vm510_vm1, %v505_v30, %v507_v33  ;;  %v514_v47 = vsel %vm510_vm1, %v507_v33, %v509_v42 }
 0x123   : > { %608 = vmatpush.bf16.msrb.mxu2 %v553_v34 }
 0x128   : > { %v486_v35 = vpop.permute.xlu1 %485 }
 0x129   : > { %v496_v36 = vsel %vm495_vm4, %v486_v35, %v488_v22  ;;  %v490_v37 = vpop.permute.xlu0 %489 }
 0x12a   : > { %v497_v38 = vsel %vm495_vm4, %v488_v22, %v490_v37  ;;  %v533_v39 = vsel %vm530_vm2, %v478_v2, %v496_v36 }
 0x12b   : > { %590 = vmatpush.bf16.msrb.mxu1 %v533_v39  ;;  %v537_v40 = vsel %vm530_vm2, %v1059_v1, %v497_v38 }
 0x12c   : > { %609 = vmatpush.bf16.msrb.mxu2 %v537_v40 }
 0x12e   : > { %917 = vmatmul.msk.bf16.vlgmr.msrb.gmra.mxu1 %vm356_vm0, %v938_v41 }
 0x12f   : > { %919 = vmatmul.msk.bf16.vlgmr.msrb.gmra.mxu2 %vm356_vm0, %v938_v41 }
 0x130   : > { %v522_v43 = vpop.permute.xlu1 %521 }
 0x131   : > { %v528_v45 = vsel %vm525_vm3, %v520_v23, %v522_v43  ;;  %v524_v46 = vpop.permute.xlu0 %523 }
 0x132   : > { %v529_v48 = vsel %vm525_vm3, %v522_v43, %v524_v46  ;;  %v557_v49 = vsel %vm530_vm2, %v513_v44, %v528_v45 }
 0x133   : > { %627 = vmatpush.bf16.msrb.mxu3 %v557_v49  ;;  %v561_v50 = vsel %vm530_vm2, %v514_v47, %v529_v48 }
 0x134   : > { %646 = vmatpush.bf16.msra.mxu0 %v561_v50 }
 0x138   : > { %v492_v51 = vpop.permute.xlu1 %491 }
 0x139   : > { %v498_v52 = vsel %vm495_vm4, %v490_v37, %v492_v51 }
 0x13a   : > { %v541_v53 = vsel %vm530_vm2, %v1063_v12, %v498_v52  ;;  %v1124_v12 = vperm.slane %v659_v58, 3 }
 0x13b   : > { %628 = vmatpush.bf16.msrb.mxu3 %v541_v53 }
 0x13e   : > { %921 = vmatmul.msk.bf16.vlgmr.msrb.gmra.mxu3 %vm356_vm0, %v938_v41  ;;  %918 = vmatmul.msk.bf16.gmra.mxu1 %vm356_vm0, %v939_v54 }
 0x13f   : > { %920 = vmatmul.msk.bf16.gmra.mxu2 %vm356_vm0, %v939_v54 }
 0x140   : > { %v494_v55 = vpop.permute.xlu1 %493 }
 0x141   : > { %v499_v56 = vsel %vm495_vm4, %v492_v51, %v494_v55 }
 0x142   : > { %v545_v57 = vsel %vm530_vm2, %v1065_v15, %v499_v56 }
 0x143   : > { %647 = vmatpush.bf16.msra.mxu0 %v545_v57 }
 0x146   : > { %923 = vmatmul.msk.bf16.vlgmr.msra.gmra.mxu0 %vm356_vm0, %v938_v41 }
 0x14e   : > { %922 = vmatmul.msk.bf16.gmra.mxu3 %vm356_vm0, %v939_v54 }
 0x156   : > { %924 = vmatmul.msk.bf16.gmra.mxu0 %vm356_vm0, %v939_v54 }
 0x1ab   : > { %v592_v59 = vpop.f32.mrf.mxu1 }
 0x1ac   : > { %v669_v62 = vmul.f32 %v661_v60, %v592_v59 }
 0x1ae   : > { %v683_v8 = vmul.f32 %v669_v62, %v669_v62 }
 0x1b2   : > { %v611_v63 = vpop.f32.mrf.mxu2 }
 0x1b3   : > { %v670_v0 = vmul.f32 %v662_v61, %v611_v63  ;;  %v594_v1 = vpop.f32.mrf.mxu1 }
 0x1b4   : > { %v693_v3 = vmul.f32 %v661_v60, %v594_v1 }
 0x1b5   : > { %v673_v2 = vpack.c.bf16 %v670_v0, %v669_v62  ;;  %v684_v9 = vmul.f32 %v670_v0, %v670_v0  ;;  %v677_v11 = vadd.f32 %v670_v0, %v669_v62 }
 0x1b6   : > { %v707_v29 = vmul.f32 %v693_v3, %v693_v3 }
 0x1b7   : > { %675 = vst [vmem:[%s1118_s29] sm:$0xff] %v673_v2  ;;  %v687_v17 = vadd.f32 %v684_v9, %v683_v8 }
 0x1ba   : > { %v613_v4 = vpop.f32.mrf.mxu2 }
 0x1bb   : > { %v694_v5 = vmul.f32 %v662_v61, %v613_v4  ;;  %v597_v6 = vpop.f32.mrf.mxu1 }
 0x1bc   : > { %v717_v14 = vmul.f32 %v661_v60, %v597_v6 }
 0x1bd   : > { %v697_v7 = vpack.c.bf16 %v694_v5, %v693_v3  ;;  %v708_v30 = vmul.f32 %v694_v5, %v694_v5  ;;  %v701_v34 = vadd.f32 %v694_v5, %v693_v3 }
 0x1be   : > { %v731_v43 = vmul.f32 %v717_v14, %v717_v14 }
 0x1bf   : > { %699 = vst [vmem:[%s1118_s29 + $0x10] sm:$0xff] %v697_v7  ;;  %v711_v42 = vadd.f32 %v708_v30, %v707_v29 }
 0x1c1   : > { %v630_v13 = vpop.f32.mrf.mxu3 }
 0x1c2   : > { %v671_v15 = vmul.f32 %v1121_v10, %v630_v13  ;;  %v616_v16 = vpop.f32.mrf.mxu2 }
 0x1c3   : > { %v649_v18 = vpop.f32.mrf.mxu0  ;;  %v718_v19 = vmul.f32 %v662_v61, %v616_v16  ;;  %v599_v28 = vpop.f32.mrf.mxu1 }
 0x1c4   : > { %v685_v20 = vmul.f32 %v671_v15, %v671_v15  ;;  %v672_v21 = vmul.f32 %v1124_v12, %v649_v18  ;;  %v678_v22 = vadd.f32 %v677_v11, %v671_v15  ;;  %v741_v33 = vmul.f32 %v661_v60, %v599_v28 }
 0x1c5   : > { %v721_v23 = vpack.c.bf16 %v718_v19, %v717_v14  ;;  %v732_v44 = vmul.f32 %v718_v19, %v718_v19  ;;  %v725_v50 = vadd.f32 %v718_v19, %v717_v14 }
 0x1c6   : > { %v674_v24 = vpack.c.bf16 %v672_v21, %v671_v15  ;;  %v679_v25 = vadd.f32 %v678_v22, %v672_v21  ;;  %v686_v26 = vmul.f32 %v672_v21, %v672_v21  ;;  %v688_v27 = vadd.f32 %v687_v17, %v685_v20 }
 0x1c7   : > { %723 = vst [vmem:[%s1118_s29 + $0x20] sm:$0xff] %v721_v23  ;;  %v735_v54 = vadd.f32 %v732_v44, %v731_v43  ;;  %v755_v62 = vmul.f32 %v741_v33, %v741_v33 }
 0x1c8   : > { %676 = vst [vmem:[%s1118_s29 + $0x8] sm:$0xff] %v674_v24  ;;  %680 = vadd.xlane.f32.xlu2 %v679_v25  ;;  %v689_v31 = vadd.f32 %v688_v27, %v686_v26 }
 0x1c9   : > { %v632_v32 = vpop.f32.mrf.mxu3 }
 0x1ca   : > { %v695_v35 = vmul.f32 %v1121_v10, %v632_v32  ;;  %690 = vadd.xlane.f32.xlu1 %v689_v31  ;;  %v618_v36 = vpop.f32.mrf.mxu2 }
 0x1cb   : > { %v651_v37 = vpop.f32.mrf.mxu0  ;;  %v742_v38 = vmul.f32 %v662_v61, %v618_v36 }
 0x1cc   : > { %v709_v39 = vmul.f32 %v695_v35, %v695_v35  ;;  %v696_v40 = vmul.f32 %v1124_v12, %v651_v37  ;;  %v702_v41 = vadd.f32 %v701_v34, %v695_v35 }
 0x1cd   : > { %v745_v45 = vpack.c.bf16 %v742_v38, %v741_v33  ;;  %v756_v63 = vmul.f32 %v742_v38, %v742_v38  ;;  %v749_v3 = vadd.f32 %v742_v38, %v741_v33 }
 0x1ce   : > { %v698_v46 = vpack.c.bf16 %v696_v40, %v695_v35  ;;  %v703_v47 = vadd.f32 %v702_v41, %v696_v40  ;;  %v710_v48 = vmul.f32 %v696_v40, %v696_v40  ;;  %v712_v49 = vadd.f32 %v711_v42, %v709_v39 }
 0x1cf   : > { %747 = vst [vmem:[%s1118_s29 + $0x30] sm:$0xff] %v745_v45  ;;  %v759_v9 = vadd.f32 %v756_v63, %v755_v62 }
 0x1d0   : > { %700 = vst [vmem:[%s1118_s29 + $0x18] sm:$0xff] %v698_v46  ;;  %704 = vadd.xlane.f32.xlu0 %v703_v47  ;;  %v713_v51 = vadd.f32 %v712_v49, %v710_v48 }
 0x1d1   : > { %v635_v52 = vpop.f32.mrf.mxu3 }
 0x1d2   : > { %v719_v53 = vmul.f32 %v1121_v10, %v635_v52  ;;  %714 = vadd.xlane.f32.xlu2 %v713_v51 }
 0x1d3   : > { %v654_v55 = vpop.f32.mrf.mxu0 }
 0x1d4   : > { %v733_v56 = vmul.f32 %v719_v53, %v719_v53  ;;  %v720_v57 = vmul.f32 %v1124_v12, %v654_v55  ;;  %v726_v58 = vadd.f32 %v725_v50, %v719_v53 }
 0x1d6   : > { %v722_v59 = vpack.c.bf16 %v720_v57, %v719_v53  ;;  %v734_v60 = vmul.f32 %v720_v57, %v720_v57  ;;  %v736_v61 = vadd.f32 %v735_v54, %v733_v56  ;;  %v727_v1 = vadd.f32 %v726_v58, %v720_v57 }
 0x1d8   : > { %724 = vst [vmem:[%s1118_s29 + $0x28] sm:$0xff] %v722_v59  ;;  %v737_v0 = vadd.f32 %v736_v61, %v734_v60 }
 0x1d9   : > { %v637_v2 = vpop.f32.mrf.mxu3 }
 0x1da   : > { %v743_v4 = vmul.f32 %v1121_v10, %v637_v2  ;;  %738 = vadd.xlane.f32.xlu0 %v737_v0  ;;  %728 = vadd.xlane.f32.xlu2 %v727_v1 }
 0x1db   : > { %v656_v5 = vpop.f32.mrf.mxu0 }
 0x1dc   : > { %v757_v6 = vmul.f32 %v743_v4, %v743_v4  ;;  %v744_v7 = vmul.f32 %v1124_v12, %v656_v5  ;;  %v750_v8 = vadd.f32 %v749_v3, %v743_v4 }
 0x1de   : > { %v746_v11 = vpack.c.bf16 %v744_v7, %v743_v4  ;;  %v751_v13 = vadd.f32 %v750_v8, %v744_v7  ;;  %v758_v14 = vmul.f32 %v744_v7, %v744_v7  ;;  %v760_v15 = vadd.f32 %v759_v9, %v757_v6 }
 0x1e0   : > { %748 = vst [vmem:[%s1118_s29 + $0x38] sm:$0xff] %v746_v11  ;;  %752 = vadd.xlane.f32.xlu1 %v751_v13  ;;  %v761_v16 = vadd.f32 %v760_v15, %v758_v14 }
 0x1e2   : > { %762 = vadd.xlane.f32.xlu2 %v761_v16 }
 0x23b   : > { %v681_v17 = vpop.xlane.xlu2 %680 }
 0x23d   : > { %v691_v19 = vpop.xlane.xlu1 %690 }
 0x243   : > { %v705_v10 = vpop.xlane.xlu0 %704 }
 0x244   : > { %v706_v21 = vadd.f32 %v705_v10, %v681_v17 }
 0x245   : > { %v715_v18 = vpop.xlane.xlu2 %714 }
 0x246   : > { %v716_v12 = vadd.f32 %v715_v18, %v691_v19 }
 0x24d   : > { %v729_v20 = vpop.xlane.xlu2 %728  ;;  %v739_v22 = vpop.xlane.xlu0 %738 }
 0x24e   : > { %v730_v23 = vadd.f32 %v729_v20, %v706_v21  ;;  %v740_v25 = vadd.f32 %v739_v22, %v716_v12 }
 0x253   : > { %v753_v24 = vpop.xlane.xlu1 %752 }
 0x254   : > { %v754_v26 = vadd.f32 %v753_v24, %v730_v23 }
 0x255   : > { %v763_v27 = vpop.xlane.xlu2 %762 }
 0x256   : > { %766 = vst.msk [vmem:[%s289_s10] sm:$0xff] %vm765_vm5, %v754_v26  ;;  %v764_v28 = vadd.f32 %v763_v27, %v740_v25 }
 0x258   : > { %768 = vst.msk [vmem:[%s289_s10] sm:$0xff] %vm767_vm6, %v764_v28 }
 0x259 PF: > { %s18_s24 = sadd.s32 1, %s960_s24  }
 0x25a   : > { %p15_p4 = scmp.ge.s32.totalorder %s18_s24, 4  }
 0x25c   :  { %17 = sbr.rel (!%p15_p4) target bundleno = 1 (0x1), region = 86 }

// kernel: decoder_block.7
= control target key start
LH: loop header
LB: loop body
LE: loop exit
PB: predicated region body
PF: predicated region fallthrough
CT: control target
= control target key end

     0   :  { %s582_s12 = smov 0   ;;  %s584_s13 = smov 0   ;;  %s734_s0 = inlined_call_operand.vmem [shape: bf16[2,16,2048], index: 0, kind: input, shape index: {}]   ;;  %s735_s1 = inlined_call_operand.vmem [shape: f32[16,1], index: 1, kind: input, shape index: {}]   ;;  %s736_s2 = inlined_call_operand.vmem [shape: f32[16,1], index: 2, kind: input, shape index: {}]   ;;  %s737_s3 = inlined_call_operand.vmem [shape: bf16[2,16,2048], index: 3, kind: output, shape index: {}]  }
   0x1   :  { %s586_s14 = smov 0  }
   0x2 LB: > { %s25_s15 = sadd.s32 1, %s555_s13  ;;  %p501_p0 = scmp.ge.s32.totalorder %s559_s14, 1  ;;  %s559_s14 = sphi %s586_s14, %s13_s14   ;;  %s555_s13 = sphi %s584_s13, %s739_s13   ;;  %s551_s12 = sphi %s582_s12, %s738_s12  }
   0x3   : > { %p27_p1 = scmp.ge.s32.totalorder %s25_s15, 2  ;;  %p158_p2 = scmp.lt.s32.totalorder %s559_s14, 3 }
   0x5   : > { %s741_s15 = smov (%p27_p1, %s25_s15), 0  ;;  %p159_p3 = pnand %p501_p0, %p158_p2 }
   0x6   : > { %p191_p4 = scmp.lt.s32.totalorder (!%p159_p3), %s551_s12, 1 }
   0x7   : > { %162 = sbr.rel (%p159_p3) target bundleno = 164 (0xa4), region = 32 }
   0xc   : > { %v302_v0 = vld [vmem:[%s736_s2] sm:$0xff]  ;;  %v561_v2 = vmov 0   ;;  %v303_v3 = vld [vmem:[%s736_s2 + $0x8] sm:$0xff]  ;;  %s743_s12 = smov (!%p191_p4, %s551_s12), 1 }
   0xd   : > { %v258_v1 = vld [vmem:[%s735_s1] sm:$0xff]  ;;  %536 = vset.pattern.permute.xlu1 %v561_v2  ;;  %535 = vset.pattern.permute.xlu0 %v561_v2  ;;  %v259_v4 = vld [vmem:[%s735_s1 + $0x8] sm:$0xff]  ;;  %s508_s24 = sshll.u32 %s743_s12, 7 }
   0xe   : > { %306 = vperm.xlu1 %536, %v302_v0   ;;  %262 = vperm.xlu0 %535, %v258_v1   ;;  %s620_s27 = scalar_lea.vmem %s734_s0, %s508_s24  ;;  %s675_s30 = scalar_lea.vmem %s737_s3, %s508_s24 }
   0xf   : > { %v210_v5 = vld [vmem:[%s620_s27] sm:$0xff]  ;;  %v211_v6 = vld [vmem:[%s620_s27 + $0x8] sm:$0xff]  ;;  %v212_v7 = vld [vmem:[%s620_s27 + $0x10] sm:$0xff] }
  0x10   : > { %v213_v8 = vld [vmem:[%s620_s27 + $0x18] sm:$0xff]  ;;  %v214_v9 = vld [vmem:[%s620_s27 + $0x20] sm:$0xff]  ;;  %v215_v10 = vld [vmem:[%s620_s27 + $0x28] sm:$0xff]  ;;  %v226_v13 = vunpack.c.l.bf16 %v210_v5  ;;  %v227_v14 = vunpack.c.h.bf16 %v210_v5  ;;  %v228_v15 = vunpack.c.l.bf16 %v211_v6  ;;  %v229_v16 = vunpack.c.h.bf16 %v211_v6 }
  0x11   : > { %v216_v11 = vld [vmem:[%s620_s27 + $0x30] sm:$0xff]  ;;  %v217_v12 = vld [vmem:[%s620_s27 + $0x38] sm:$0xff]  ;;  %v230_v17 = vunpack.c.l.bf16 %v212_v7  ;;  %v231_v18 = vunpack.c.h.bf16 %v212_v7  ;;  %v232_v19 = vunpack.c.l.bf16 %v213_v8  ;;  %v233_v20 = vunpack.c.h.bf16 %v213_v8  ;;  %v631_v21 = vld [vmem:[%s620_s27 + $0x40] sm:$0xff] }
  0x12   : > { %v634_v22 = vld [vmem:[%s620_s27 + $0x48] sm:$0xff]  ;;  %v234_v23 = vunpack.c.l.bf16 %v214_v9  ;;  %v235_v24 = vunpack.c.h.bf16 %v214_v9  ;;  %v236_v25 = vunpack.c.l.bf16 %v215_v10  ;;  %v237_v26 = vunpack.c.h.bf16 %v215_v10  ;;  %v637_v27 = vld [vmem:[%s620_s27 + $0x50] sm:$0xff]  ;;  %v640_v28 = vld [vmem:[%s620_s27 + $0x58] sm:$0xff] }
  0x13   : > { %v238_v29 = vunpack.c.l.bf16 %v216_v11  ;;  %v239_v30 = vunpack.c.h.bf16 %v216_v11  ;;  %v240_v31 = vunpack.c.l.bf16 %v217_v12  ;;  %v241_v32 = vunpack.c.h.bf16 %v217_v12  ;;  %v643_v33 = vld [vmem:[%s620_s27 + $0x60] sm:$0xff]  ;;  %v646_v34 = vld [vmem:[%s620_s27 + $0x68] sm:$0xff]  ;;  %v649_v35 = vld [vmem:[%s620_s27 + $0x70] sm:$0xff] }
  0x14   : > { %v652_v36 = vld [vmem:[%s620_s27 + $0x78] sm:$0xff]  ;;  %v242_v37 = vunpack.c.l.bf16 %v631_v21  ;;  %v243_v38 = vunpack.c.h.bf16 %v631_v21  ;;  %v244_v39 = vunpack.c.l.bf16 %v634_v22  ;;  %v245_v40 = vunpack.c.h.bf16 %v634_v22 }
  0x15   : > { %v246_v41 = vunpack.c.l.bf16 %v637_v27  ;;  %v247_v42 = vunpack.c.h.bf16 %v637_v27  ;;  %v248_v43 = vunpack.c.l.bf16 %v640_v28  ;;  %v249_v44 = vunpack.c.h.bf16 %v640_v28 }
  0x16   : > { %311 = vperm.xlu1 %536, %v303_v3   ;;  %267 = vperm.xlu0 %535, %v259_v4   ;;  %v250_v45 = vunpack.c.l.bf16 %v643_v33  ;;  %v251_v46 = vunpack.c.h.bf16 %v643_v33  ;;  %v252_v47 = vunpack.c.l.bf16 %v646_v34  ;;  %v253_v48 = vunpack.c.h.bf16 %v646_v34 }
  0x17   : > { %v254_v50 = vunpack.c.l.bf16 %v649_v35  ;;  %v255_v51 = vunpack.c.h.bf16 %v649_v35  ;;  %v256_v52 = vunpack.c.l.bf16 %v652_v36  ;;  %v257_v53 = vunpack.c.h.bf16 %v652_v36 }
  0x80   : > { %v263_v49 = vpop.permute.xlu0 %262  ;;  %v307_v2 = vpop.permute.xlu1 %306 }
  0x81   : > { %v270_v54 = vmul.f32 %v263_v49, %v226_v13  ;;  %v271_v55 = vmul.f32 %v263_v49, %v227_v14  ;;  %v272_v56 = vmul.f32 %v263_v49, %v228_v15  ;;  %v273_v57 = vmul.f32 %v263_v49, %v229_v16 }
  0x82   : > { %v274_v58 = vmul.f32 %v263_v49, %v230_v17  ;;  %v275_v59 = vmul.f32 %v263_v49, %v231_v18  ;;  %v276_v60 = vmul.f32 %v263_v49, %v232_v19  ;;  %v277_v61 = vmul.f32 %v263_v49, %v233_v20 }
  0x83   : > { %v278_v62 = vmul.f32 %v263_v49, %v234_v23  ;;  %v279_v63 = vmul.f32 %v263_v49, %v235_v24  ;;  %v280_v0 = vmul.f32 %v263_v49, %v236_v25  ;;  %v281_v1 = vmul.f32 %v263_v49, %v237_v26 }
  0x84   : > { %v282_v3 = vmul.f32 %v263_v49, %v238_v29  ;;  %v283_v4 = vmul.f32 %v263_v49, %v239_v30  ;;  %v284_v5 = vmul.f32 %v263_v49, %v240_v31  ;;  %v285_v6 = vmul.f32 %v263_v49, %v241_v32 }
  0x85   : > { %v314_v7 = vadd.f32 %v307_v2, %v270_v54  ;;  %v315_v8 = vadd.f32 %v307_v2, %v271_v55  ;;  %v316_v9 = vadd.f32 %v307_v2, %v272_v56  ;;  %v317_v10 = vadd.f32 %v307_v2, %v273_v57 }
  0x86   : > { %v318_v11 = vadd.f32 %v307_v2, %v274_v58  ;;  %v319_v12 = vadd.f32 %v307_v2, %v275_v59  ;;  %v320_v13 = vadd.f32 %v307_v2, %v276_v60  ;;  %v321_v14 = vadd.f32 %v307_v2, %v277_v61 }
  0x87   : > { %v322_v15 = vadd.f32 %v307_v2, %v278_v62  ;;  %v323_v16 = vadd.f32 %v307_v2, %v279_v63  ;;  %v324_v17 = vadd.f32 %v307_v2, %v280_v0  ;;  %v325_v18 = vadd.f32 %v307_v2, %v281_v1 }
  0x88   : > { %v326_v19 = vadd.f32 %v307_v2, %v282_v3  ;;  %v327_v20 = vadd.f32 %v307_v2, %v283_v4  ;;  %v328_v23 = vadd.f32 %v307_v2, %v284_v5  ;;  %v329_v24 = vadd.f32 %v307_v2, %v285_v6  ;;  %v268_v63 = vpop.permute.xlu0 %267 }
  0x89   : > { %v346_v25 = vmax.f32 %v314_v7, 0.0  ;;  %v347_v26 = vmax.f32 %v315_v8, 0.0  ;;  %v348_v29 = vmax.f32 %v316_v9, 0.0  ;;  %v349_v30 = vmax.f32 %v317_v10, 0.0 }
  0x8a   : > { %v350_v31 = vmax.f32 %v318_v11, 0.0  ;;  %v351_v32 = vmax.f32 %v319_v12, 0.0  ;;  %v352_v49 = vmax.f32 %v320_v13, 0.0  ;;  %v353_v54 = vmax.f32 %v321_v14, 0.0 }
  0x8b   : > { %v354_v55 = vmax.f32 %v322_v15, 0.0  ;;  %v355_v56 = vmax.f32 %v323_v16, 0.0  ;;  %v356_v57 = vmax.f32 %v324_v17, 0.0  ;;  %v357_v58 = vmax.f32 %v325_v18, 0.0 }
  0x8c   : > { %v358_v59 = vmax.f32 %v326_v19, 0.0  ;;  %v359_v60 = vmax.f32 %v327_v20, 0.0  ;;  %v360_v61 = vmax.f32 %v328_v23, 0.0  ;;  %v361_v62 = vmax.f32 %v329_v24, 0.0 }
  0x8d   : > { %v378_v0 = vpack.c.bf16 %v347_v26, %v346_v25  ;;  %v379_v1 = vpack.c.bf16 %v349_v30, %v348_v29  ;;  %v380_v2 = vpack.c.bf16 %v351_v32, %v350_v31  ;;  %v381_v3 = vpack.c.bf16 %v353_v54, %v352_v49 }
  0x8e   : > { %v382_v4 = vpack.c.bf16 %v355_v56, %v354_v55  ;;  %v383_v5 = vpack.c.bf16 %v357_v58, %v356_v57  ;;  %v384_v6 = vpack.c.bf16 %v359_v60, %v358_v59  ;;  %v385_v7 = vpack.c.bf16 %v361_v62, %v360_v61 }
  0x8f   : > { %394 = vst [vmem:[%s675_s30] sm:$0xff] %v378_v0  ;;  %v286_v8 = vmul.f32 %v268_v63, %v242_v37  ;;  %v287_v9 = vmul.f32 %v268_v63, %v243_v38  ;;  %v288_v10 = vmul.f32 %v268_v63, %v244_v39  ;;  %v289_v11 = vmul.f32 %v268_v63, %v245_v40  ;;  %v312_v40 = vpop.permute.xlu1 %311 }
  0x90   : > { %395 = vst [vmem:[%s675_s30 + $0x8] sm:$0xff] %v379_v1  ;;  %v290_v12 = vmul.f32 %v268_v63, %v246_v41  ;;  %v291_v13 = vmul.f32 %v268_v63, %v247_v42  ;;  %v292_v37 = vmul.f32 %v268_v63, %v248_v43  ;;  %v293_v21 = vmul.f32 %v268_v63, %v249_v44 }
  0x91   : > { %396 = vst [vmem:[%s675_s30 + $0x10] sm:$0xff] %v380_v2  ;;  %v294_v22 = vmul.f32 %v268_v63, %v250_v45  ;;  %v295_v38 = vmul.f32 %v268_v63, %v251_v46  ;;  %v296_v39 = vmul.f32 %v268_v63, %v252_v47  ;;  %v297_v27 = vmul.f32 %v268_v63, %v253_v48 }
  0x92   : > { %397 = vst [vmem:[%s675_s30 + $0x18] sm:$0xff] %v381_v3  ;;  %v298_v28 = vmul.f32 %v268_v63, %v254_v50  ;;  %v299_v41 = vmul.f32 %v268_v63, %v255_v51  ;;  %v300_v42 = vmul.f32 %v268_v63, %v256_v52  ;;  %v301_v33 = vmul.f32 %v268_v63, %v257_v53 }
  0x93   : > { %398 = vst [vmem:[%s675_s30 + $0x20] sm:$0xff] %v382_v4  ;;  %v330_v43 = vadd.f32 %v312_v40, %v286_v8  ;;  %v331_v34 = vadd.f32 %v312_v40, %v287_v9  ;;  %v332_v44 = vadd.f32 %v312_v40, %v288_v10  ;;  %v333_v45 = vadd.f32 %v312_v40, %v289_v11 }
  0x94   : > { %399 = vst [vmem:[%s675_s30 + $0x28] sm:$0xff] %v383_v5  ;;  %v334_v46 = vadd.f32 %v312_v40, %v290_v12  ;;  %v335_v47 = vadd.f32 %v312_v40, %v291_v13  ;;  %v336_v48 = vadd.f32 %v312_v40, %v292_v37  ;;  %v337_v50 = vadd.f32 %v312_v40, %v293_v21 }
  0x95   : > { %400 = vst [vmem:[%s675_s30 + $0x30] sm:$0xff] %v384_v6  ;;  %v338_v35 = vadd.f32 %v312_v40, %v294_v22  ;;  %v339_v51 = vadd.f32 %v312_v40, %v295_v38  ;;  %v340_v14 = vadd.f32 %v312_v40, %v296_v39  ;;  %v341_v15 = vadd.f32 %v312_v40, %v297_v27 }
  0x96   : > { %401 = vst [vmem:[%s675_s30 + $0x38] sm:$0xff] %v385_v7  ;;  %v342_v52 = vadd.f32 %v312_v40, %v298_v28  ;;  %v343_v36 = vadd.f32 %v312_v40, %v299_v41  ;;  %v344_v53 = vadd.f32 %v312_v40, %v300_v42  ;;  %v345_v16 = vadd.f32 %v312_v40, %v301_v33 }
  0x97   : > { %v362_v17 = vmax.f32 %v330_v43, 0.0  ;;  %v363_v18 = vmax.f32 %v331_v34, 0.0  ;;  %v364_v19 = vmax.f32 %v332_v44, 0.0  ;;  %v365_v20 = vmax.f32 %v333_v45, 0.0 }
  0x98   : > { %v366_v23 = vmax.f32 %v334_v46, 0.0  ;;  %v367_v24 = vmax.f32 %v335_v47, 0.0  ;;  %v368_v25 = vmax.f32 %v336_v48, 0.0  ;;  %v369_v26 = vmax.f32 %v337_v50, 0.0 }
  0x99   : > { %v370_v29 = vmax.f32 %v338_v35, 0.0  ;;  %v371_v30 = vmax.f32 %v339_v51, 0.0  ;;  %v372_v31 = vmax.f32 %v340_v14, 0.0  ;;  %v373_v32 = vmax.f32 %v341_v15, 0.0 }
  0x9a   : > { %v374_v49 = vmax.f32 %v342_v52, 0.0  ;;  %v375_v54 = vmax.f32 %v343_v36, 0.0  ;;  %v386_v55 = vpack.c.bf16 %v363_v18, %v362_v17  ;;  %v387_v56 = vpack.c.bf16 %v365_v20, %v364_v19 }
  0x9b   : > { %v388_v57 = vpack.c.bf16 %v367_v24, %v366_v23  ;;  %v376_v58 = vmax.f32 %v344_v53, 0.0  ;;  %v377_v59 = vmax.f32 %v345_v16, 0.0  ;;  %v389_v60 = vpack.c.bf16 %v369_v26, %v368_v25 }
  0x9c   : > { %v390_v61 = vpack.c.bf16 %v371_v30, %v370_v29  ;;  %402 = vst [vmem:[%s675_s30 + $0x40] sm:$0xff] %v386_v55  ;;  %v391_v62 = vpack.c.bf16 %v373_v32, %v372_v31  ;;  %v392_v63 = vpack.c.bf16 %v375_v54, %v374_v49 }
  0x9d   : > { %403 = vst [vmem:[%s675_s30 + $0x48] sm:$0xff] %v387_v56  ;;  %v393_v0 = vpack.c.bf16 %v377_v59, %v376_v58 }
  0x9e   : > { %404 = vst [vmem:[%s675_s30 + $0x50] sm:$0xff] %v388_v57 }
  0x9f   : > { %405 = vst [vmem:[%s675_s30 + $0x58] sm:$0xff] %v389_v60 }
  0xa0   : > { %406 = vst [vmem:[%s675_s30 + $0x60] sm:$0xff] %v390_v61 }
  0xa1   : > { %407 = vst [vmem:[%s675_s30 + $0x68] sm:$0xff] %v391_v62 }
  0xa2   : > { %408 = vst [vmem:[%s675_s30 + $0x70] sm:$0xff] %v392_v63 }
  0xa3   : > { %409 = vst [vmem:[%s675_s30 + $0x78] sm:$0xff] %v393_v0 }
  0xa4 PF: > { %s13_s14 = sadd.s32 1, %s559_s14   ;;  %s738_s12 = smov %s555_s13 }
  0xa5   : > { %p10_p5 = scmp.ge.s32.totalorder %s13_s14, 4   ;;  %s739_s13 = smov %s741_s15 }
  0xa7   :  { %12 = sbr.rel (!%p10_p5) target bundleno = 2 (0x2), region = 62 }

</bundles_post_ra>
